<compile_context>
chip_gen: v7x
topology: tpu7x:2x2x1
jax: 0.10.0
libtpu: 0.0.40
codegen_flags: <defaults>
</compile_context>

<pallas_src>
import functools

import jax
import jax.numpy as jnp
from jax.experimental import pallas as pl
from jax.experimental.pallas import tpu as pltpu

# MLP dims of the PyTorch module: 1 -> 64 -> 128 -> 256 -> 128 -> 1, ReLU between.
DIMS = (1, 64, 128, 256, 128, 1)


def _make_kernel(bf16_elementwise: bool):
    """Whole 5-layer ReLU MLP, features-major with the batch on the lane axis."""
    act_dt = jnp.bfloat16 if bf16_elementwise else jnp.float32

    def kernel(x_ref,
               w1_ref, b1_ref,   # (64,1), (64,1)    act_dt   (VPU outer product)
               w2_ref, b2_ref,   # (128,64) bf16, (128,1) act_dt   (MXU)
               w3_ref, b3_ref,   # (256,128) bf16, (256,1) act_dt  (MXU)
               w4_ref, b4_ref,   # (128,256) bf16, (128,1) act_dt  (MXU)
               w5_ref, b5_ref,   # (128,1) act_dt, (1,1) f32  (VPU + XLU reduce)
               o_ref):           # (1, TB) f32
        x = x_ref[...].astype(act_dt)                              # (1, TB)

        # Layer 1: Linear(1,64). K=1 matmul == outer product -> VPU broadcast FMA.
        h = jnp.maximum(w1_ref[...] * x + b1_ref[...], 0)          # (64, TB)

        # Layers 2-4: MXU matmuls (bf16 inputs, f32 accumulation); bias+ReLU on VPU
        # in act_dt (packed bf16 on v6e/v7x halves VALU work, f32 on v5e).
        def dense_relu(w_ref, b_ref, h):
            acc = jnp.dot(w_ref[...], h.astype(jnp.bfloat16),
                          preferred_element_type=jnp.float32)
            return jnp.maximum(acc.astype(act_dt) + b_ref[...], 0)

        h = dense_relu(w2_ref, b2_ref, h)                          # (128, TB)
        h = dense_relu(w3_ref, b3_ref, h)                          # (256, TB)
        h = dense_relu(w4_ref, b4_ref, h)                          # (128, TB)

        # Layer 5: Linear(128,1). M=1 -> VPU multiply + XLU sublane reduce (f32 acc).
        prod = (w5_ref[...] * h).astype(jnp.float32)               # (128, TB)
        out = jnp.sum(prod, axis=0, keepdims=True) + b5_ref[...]   # (1, TB)

        o_ref[...] = out.astype(o_ref.dtype)                       # lane-dense store

    return kernel


def prepare_params(params, *, bf16_elementwise=True):
    """One-time conversion of PyTorch-layout params ((out,in) W, (out,) b) to the
    kernel's features-major layouts/dtypes.  Do NOT call per forward pass."""
    (w1, b1), (w2, b2), (w3, b3), (w4, b4), (w5, b5) = params
    act_dt = jnp.bfloat16 if bf16_elementwise else jnp.float32

    w1k = jnp.asarray(w1, act_dt)                 # (64, 1)    VPU layer
    w2k = jnp.asarray(w2, jnp.bfloat16)           # (128, 64)  MXU
    w3k = jnp.asarray(w3, jnp.bfloat16)           # (256, 128) MXU
    w4k = jnp.asarray(w4, jnp.bfloat16)           # (128, 256) MXU
    w5k = jnp.asarray(w5, act_dt).T               # (128, 1)   VPU/XLU layer
    b1k = jnp.asarray(b1, act_dt).reshape(-1, 1)
    b2k = jnp.asarray(b2, act_dt).reshape(-1, 1)
    b3k = jnp.asarray(b3, act_dt).reshape(-1, 1)
    b4k = jnp.asarray(b4, act_dt).reshape(-1, 1)
    b5k = jnp.asarray(b5, jnp.float32).reshape(-1, 1)   # final bias stays f32
    return (w1k, b1k, w2k, b2k, w3k, b3k, w4k, b4k, w5k, b5k)


def _round_up(a, m):
    return ((a + m - 1) // m) * m


def relu_model_forward(x, kernel_params, *, tile_b=2048, bf16_elementwise=True,
                       vmem_limit_bytes=None):
    """x: (N, 1) float32.  kernel_params: output of prepare_params()."""
    n, f = x.shape
    assert f == 1, "ReLUModel takes scalar features: x must be (N, 1)"

    # --- batch tiling: lane-align, clamp tile, pad to a multiple of the tile ---
    n128 = _round_up(n, 128)
    tile = max(128, (min(tile_b, n128) // 128) * 128)
    # Prefer >= 2 grid steps so ("parallel",) can shard across v7x's 2 TensorCores.
    if n128 > 128 and n128 <= tile:
        tile = max(128, ((n128 // 2) // 128) * 128)
    n_pad = _round_up(n128, tile)
    grid = (n_pad // tile,)

    x_row = jnp.pad(x.astype(jnp.float32).reshape(1, n), ((0, 0), (0, n_pad - n)))

    def const_spec(a):
        # Full-array block, same block every grid step -> fetched once, reused.
        return pl.BlockSpec(a.shape, lambda i: (0, 0))

    weight_specs = [const_spec(p) for p in kernel_params]

    # Advisory cost so XLA schedules around the custom call sensibly.
    flops = 2 * n_pad * sum(i * o for i, o in zip(DIMS[:-1], DIMS[1:]))
    param_bytes = sum(int(p.size) * p.dtype.itemsize for p in kernel_params)
    cost = pl.CostEstimate(flops=flops, transcendentals=0,
                           bytes_accessed=8 * n_pad + param_bytes)

    cp_kwargs = dict(dimension_semantics=("parallel",))
    if vmem_limit_bytes is not None:      # only needed for very large tile_b
        cp_kwargs["vmem_limit_bytes"] = int(vmem_limit_bytes)

    out = pl.pallas_call(
        _make_kernel(bf16_elementwise),
        out_shape=jax.ShapeDtypeStruct((1, n_pad), jnp.float32),
        grid_spec=pltpu.PrefetchScalarGridSpec(
            num_scalar_prefetch=0,
            grid=grid,
            in_specs=[pl.BlockSpec((1, tile), lambda i: (0, i))] + weight_specs,
            out_specs=pl.BlockSpec((1, tile), lambda i: (0, i)),
        ),
        compiler_params=pltpu.CompilerParams(**cp_kwargs),
        cost_estimate=cost,
    )(x_row, *kernel_params)

    return out[:, :n].reshape(n, 1)


# ----------------------------- references / init -----------------------------

def init_params(key):
    """PyTorch nn.Linear default init: U(-1/sqrt(fan_in), +), W stored (out, in)."""
    params = []
    for fan_in, fan_out in zip(DIMS[:-1], DIMS[1:]):
        key, kw, kb = jax.random.split(key, 3)
        bound = 1.0 / (fan_in ** 0.5)
        w = jax.random.uniform(kw, (fan_out, fan_in), jnp.float32, -bound, bound)
        b = jax.random.uniform(kb, (fan_out,), jnp.float32, -bound, bound)
        params.append((w, b))
    return params


def reference_forward_f32(x, params):
    """Pure-f32 reference matching the PyTorch module semantics."""
    h = x
    for i, (w, b) in enumerate(params):
        h = h @ w.T + b
        if i < len(params) - 1:
            h = jnp.maximum(h, 0.0)
    return h


def reference_forward_matched(x, params, *, bf16_elementwise=True):
    """Reference applying the same casts as the kernel (bf16 MXU layers; bf16 or
    f32 elementwise depending on the chip path)."""
    act_dt = jnp.bfloat16 if bf16_elementwise else jnp.float32
    (w1, b1), (w2, b2), (w3, b3), (w4, b4), (w5, b5) = params

    xb = x.astype(act_dt)                                                  # (N, 1)
    h = jnp.maximum(xb * w1.astype(act_dt)[:, 0][None, :]
                    + b1.astype(act_dt)[None, :], 0)                       # (N, 64)
    for w, b in ((w2, b2), (w3, b3), (w4, b4)):
        acc = jnp.dot(h.astype(jnp.bfloat16), w.astype(jnp.bfloat16).T,
                      preferred_element_type=jnp.float32)
        h = jnp.maximum(acc.astype(act_dt) + b.astype(act_dt)[None, :], 0)
    prod = (h * w5.astype(act_dt)[0][None, :]).astype(jnp.float32)         # (N,128)
    return jnp.sum(prod, axis=1, keepdims=True) + b5.astype(jnp.float32)[None, :]


if __name__ == "__main__":
    key = jax.random.PRNGKey(0)
    key, kx = jax.random.split(key)

    N = 200                                   # small, deliberately not a 128 multiple
    x = jax.random.normal(kx, (N, 1), jnp.float32)
    params = init_params(key)

    # v5e and earlier have no bf16 VPU path -> keep elementwise work in f32 there.
    kind = jax.devices()[0].device_kind.lower()
    use_bf16_elem = not any(v in kind for v in ("v2", "v3", "v4", "v5"))

    kparams = prepare_params(params, bf16_elementwise=use_bf16_elem)
    fwd = jax.jit(functools.partial(relu_model_forward, tile_b=2048,
                                    bf16_elementwise=use_bf16_elem))

    out = jax.block_until_ready(fwd(x, kparams))
    assert out.shape == (N, 1)

    # Tight-ish check against a reference using the kernel's exact cast sequence.
    ref_matched = reference_forward_matched(x, params, bf16_elementwise=use_bf16_elem)
    assert jnp.allclose(out, ref_matched, atol=5e-3, rtol=5e-3), \
        "mismatch vs cast-matched JAX reference"

    # Loose check against the exact f32 PyTorch-equivalent forward (bf16 quantization
    # introduces ~1e-3..1e-2 absolute error at these scales).
    ref_f32 = reference_forward_f32(x, params)
    assert jnp.allclose(out, ref_f32, atol=5e-2, rtol=5e-2), \
        "mismatch vs f32 JAX reference"

    print("KERNEL_OK")
</pallas_src>

<mosaic_0001>
module attributes {stable_mosaic.version = 11 : i64} {
  func.func @kernel(%arg0: i32, %arg1: memref<1x128xf32, #tpu.memory_space<vmem>>, %arg2: memref<64x1xbf16, #tpu.memory_space<vmem>>, %arg3: memref<64x1xbf16, #tpu.memory_space<vmem>>, %arg4: memref<128x64xbf16, #tpu.memory_space<vmem>>, %arg5: memref<128x1xbf16, #tpu.memory_space<vmem>>, %arg6: memref<256x128xbf16, #tpu.memory_space<vmem>>, %arg7: memref<256x1xbf16, #tpu.memory_space<vmem>>, %arg8: memref<128x256xbf16, #tpu.memory_space<vmem>>, %arg9: memref<128x1xbf16, #tpu.memory_space<vmem>>, %arg10: memref<128x1xbf16, #tpu.memory_space<vmem>>, %arg11: memref<1x1xf32, #tpu.memory_space<vmem>>, %arg12: memref<1x128xf32, #tpu.memory_space<vmem>>) attributes {dimension_semantics = [#tpu.dimension_semantics<parallel>], iteration_bounds = array<i64: 2>, scalar_prefetch = 0 : i64, scratch_operands = 0 : i64, tpu.core_type = #tpu.core_type<tc>, window_params = [{transform_indices = @transform_0, window_bounds = array<i64: 1, 128>}, {pipeline_mode = #tpu.pipeline_mode<synchronous>, transform_indices = @transform_1, window_bounds = array<i64: 64, 1>}, {pipeline_mode = #tpu.pipeline_mode<synchronous>, transform_indices = @transform_2, window_bounds = array<i64: 64, 1>}, {pipeline_mode = #tpu.pipeline_mode<synchronous>, transform_indices = @transform_3, window_bounds = array<i64: 128, 64>}, {pipeline_mode = #tpu.pipeline_mode<synchronous>, transform_indices = @transform_4, window_bounds = array<i64: 128, 1>}, {pipeline_mode = #tpu.pipeline_mode<synchronous>, transform_indices = @transform_5, window_bounds = array<i64: 256, 128>}, {pipeline_mode = #tpu.pipeline_mode<synchronous>, transform_indices = @transform_6, window_bounds = array<i64: 256, 1>}, {pipeline_mode = #tpu.pipeline_mode<synchronous>, transform_indices = @transform_7, window_bounds = array<i64: 128, 256>}, {pipeline_mode = #tpu.pipeline_mode<synchronous>, transform_indices = @transform_8, window_bounds = array<i64: 128, 1>}, {pipeline_mode = #tpu.pipeline_mode<synchronous>, transform_indices = @transform_9, window_bounds = array<i64: 128, 1>}, {pipeline_mode = #tpu.pipeline_mode<synchronous>, transform_indices = @transform_10, window_bounds = array<i64: 1, 1>}, {transform_indices = @transform_11, window_bounds = array<i64: 1, 128>}]} {
    %c0 = arith.constant 0 : index
    %c0_0 = arith.constant 0 : index
    %0 = vector.load %arg1[%c0, %c0_0] : memref<1x128xf32, #tpu.memory_space<vmem>>, vector<1x128xf32>
    %1 = arith.truncf %0 : vector<1x128xf32> to vector<1x128xbf16>
    %c0_1 = arith.constant 0 : index
    %c0_2 = arith.constant 0 : index
    %2 = vector.load %arg2[%c0_1, %c0_2] : memref<64x1xbf16, #tpu.memory_space<vmem>>, vector<64x1xbf16>
    %3 = vector.broadcast %2 : vector<64x1xbf16> to vector<64x128xbf16>
    %4 = vector.broadcast %1 : vector<1x128xbf16> to vector<64x128xbf16>
    %5 = arith.mulf %3, %4 : vector<64x128xbf16>
    %c0_3 = arith.constant 0 : index
    %c0_4 = arith.constant 0 : index
    %6 = vector.load %arg3[%c0_3, %c0_4] : memref<64x1xbf16, #tpu.memory_space<vmem>>, vector<64x1xbf16>
    %7 = vector.broadcast %6 : vector<64x1xbf16> to vector<64x128xbf16>
    %8 = arith.addf %5, %7 : vector<64x128xbf16>
    %cst = arith.constant 0.000000e+00 : bf16
    %9 = vector.broadcast %cst : bf16 to vector<64x128xbf16>
    %10 = arith.maximumf %8, %9 : vector<64x128xbf16>
    %c0_5 = arith.constant 0 : index
    %c0_6 = arith.constant 0 : index
    %11 = vector.load %arg4[%c0_5, %c0_6] : memref<128x64xbf16, #tpu.memory_space<vmem>>, vector<128x64xbf16>
    %cst_7 = arith.constant dense<0.000000e+00> : vector<128x128xf32>
    %12 = tpu.matmul %11, %10, %cst_7 {dimension_numbers = #tpu.dot_dimension_numbers<[1], [0], [0], [1], [0, 0, 1, 1], [], []>} : vector<128x64xbf16>, vector<64x128xbf16>, vector<128x128xf32> -> vector<128x128xf32>
    %13 = arith.truncf %12 : vector<128x128xf32> to vector<128x128xbf16>
    %c0_8 = arith.constant 0 : index
    %c0_9 = arith.constant 0 : index
    %14 = vector.load %arg5[%c0_8, %c0_9] : memref<128x1xbf16, #tpu.memory_space<vmem>>, vector<128x1xbf16>
    %15 = vector.broadcast %14 : vector<128x1xbf16> to vector<128x128xbf16>
    %16 = arith.addf %13, %15 : vector<128x128xbf16>
    %cst_10 = arith.constant 0.000000e+00 : bf16
    %17 = vector.broadcast %cst_10 : bf16 to vector<128x128xbf16>
    %18 = arith.maximumf %16, %17 : vector<128x128xbf16>
    %c0_11 = arith.constant 0 : index
    %c0_12 = arith.constant 0 : index
    %19 = vector.load %arg6[%c0_11, %c0_12] : memref<256x128xbf16, #tpu.memory_space<vmem>>, vector<256x128xbf16>
    %cst_13 = arith.constant dense<0.000000e+00> : vector<256x128xf32>
    %20 = tpu.matmul %19, %18, %cst_13 {dimension_numbers = #tpu.dot_dimension_numbers<[1], [0], [0], [1], [0, 0, 1, 1], [], []>} : vector<256x128xbf16>, vector<128x128xbf16>, vector<256x128xf32> -> vector<256x128xf32>
    %21 = arith.truncf %20 : vector<256x128xf32> to vector<256x128xbf16>
    %c0_14 = arith.constant 0 : index
    %c0_15 = arith.constant 0 : index
    %22 = vector.load %arg7[%c0_14, %c0_15] : memref<256x1xbf16, #tpu.memory_space<vmem>>, vector<256x1xbf16>
    %23 = vector.broadcast %22 : vector<256x1xbf16> to vector<256x128xbf16>
    %24 = arith.addf %21, %23 : vector<256x128xbf16>
    %cst_16 = arith.constant 0.000000e+00 : bf16
    %25 = vector.broadcast %cst_16 : bf16 to vector<256x128xbf16>
    %26 = arith.maximumf %24, %25 : vector<256x128xbf16>
    %c0_17 = arith.constant 0 : index
    %c0_18 = arith.constant 0 : index
    %27 = vector.load %arg8[%c0_17, %c0_18] : memref<128x256xbf16, #tpu.memory_space<vmem>>, vector<128x256xbf16>
    %cst_19 = arith.constant dense<0.000000e+00> : vector<128x128xf32>
    %28 = tpu.matmul %27, %26, %cst_19 {dimension_numbers = #tpu.dot_dimension_numbers<[1], [0], [0], [1], [0, 0, 1, 1], [], []>} : vector<128x256xbf16>, vector<256x128xbf16>, vector<128x128xf32> -> vector<128x128xf32>
    %29 = arith.truncf %28 : vector<128x128xf32> to vector<128x128xbf16>
    %c0_20 = arith.constant 0 : index
    %c0_21 = arith.constant 0 : index
    %30 = vector.load %arg9[%c0_20, %c0_21] : memref<128x1xbf16, #tpu.memory_space<vmem>>, vector<128x1xbf16>
    %31 = vector.broadcast %30 : vector<128x1xbf16> to vector<128x128xbf16>
    %32 = arith.addf %29, %31 : vector<128x128xbf16>
    %cst_22 = arith.constant 0.000000e+00 : bf16
    %33 = vector.broadcast %cst_22 : bf16 to vector<128x128xbf16>
    %34 = arith.maximumf %32, %33 : vector<128x128xbf16>
    %c0_23 = arith.constant 0 : index
    %c0_24 = arith.constant 0 : index
    %35 = vector.load %arg10[%c0_23, %c0_24] : memref<128x1xbf16, #tpu.memory_space<vmem>>, vector<128x1xbf16>
    %36 = vector.broadcast %35 : vector<128x1xbf16> to vector<128x128xbf16>
    %37 = arith.mulf %36, %34 : vector<128x128xbf16>
    %38 = arith.extf %37 : vector<128x128xbf16> to vector<128x128xf32>
    %cst_25 = arith.constant dense<0.000000e+00> : vector<128xf32>
    %39 = vector.multi_reduction <add>, %38, %cst_25 [0] : vector<128x128xf32> to vector<128xf32>
    %40 = vector.shape_cast %39 : vector<128xf32> to vector<1x128xf32>
    %c0_26 = arith.constant 0 : index
    %c0_27 = arith.constant 0 : index
    %41 = vector.load %arg11[%c0_26, %c0_27] : memref<1x1xf32, #tpu.memory_space<vmem>>, vector<1x1xf32>
    %42 = vector.broadcast %41 : vector<1x1xf32> to vector<1x128xf32>
    %43 = arith.addf %40, %42 : vector<1x128xf32>
    %c0_28 = arith.constant 0 : index
    %c0_29 = arith.constant 0 : index
    %44 = vector.load %arg12[%c0_28, %c0_29] : memref<1x128xf32, #tpu.memory_space<vmem>>, vector<1x128xf32>
    tpu.vector_store %arg12[%c0_28, %c0_29], %43 {strides = array<i32>} : memref<1x128xf32, #tpu.memory_space<vmem>>, vector<1x128xf32>,
    return
  }
  func.func @transform_0(%arg0: i32) -> (i32, i32) {
    %c0_i32 = arith.constant 0 : i32
    %c0_i32_0 = arith.constant 0 : i32
    return %c0_i32, %arg0 : i32, i32
  }
  func.func @transform_1(%arg0: i32) -> (i32, i32) {
    %c0_i32 = arith.constant 0 : i32
    %c0_i32_0 = arith.constant 0 : i32
    %c0_i32_1 = arith.constant 0 : i32
    return %c0_i32, %c0_i32_0 : i32, i32
  }
  func.func @transform_2(%arg0: i32) -> (i32, i32) {
    %c0_i32 = arith.constant 0 : i32
    %c0_i32_0 = arith.constant 0 : i32
    %c0_i32_1 = arith.constant 0 : i32
    return %c0_i32, %c0_i32_0 : i32, i32
  }
  func.func @transform_3(%arg0: i32) -> (i32, i32) {
    %c0_i32 = arith.constant 0 : i32
    %c0_i32_0 = arith.constant 0 : i32
    %c0_i32_1 = arith.constant 0 : i32
    return %c0_i32, %c0_i32_0 : i32, i32
  }
  func.func @transform_4(%arg0: i32) -> (i32, i32) {
    %c0_i32 = arith.constant 0 : i32
    %c0_i32_0 = arith.constant 0 : i32
    %c0_i32_1 = arith.constant 0 : i32
    return %c0_i32, %c0_i32_0 : i32, i32
  }
  func.func @transform_5(%arg0: i32) -> (i32, i32) {
    %c0_i32 = arith.constant 0 : i32
    %c0_i32_0 = arith.constant 0 : i32
    %c0_i32_1 = arith.constant 0 : i32
    return %c0_i32, %c0_i32_0 : i32, i32
  }
  func.func @transform_6(%arg0: i32) -> (i32, i32) {
    %c0_i32 = arith.constant 0 : i32
    %c0_i32_0 = arith.constant 0 : i32
    %c0_i32_1 = arith.constant 0 : i32
    return %c0_i32, %c0_i32_0 : i32, i32
  }
  func.func @transform_7(%arg0: i32) -> (i32, i32) {
    %c0_i32 = arith.constant 0 : i32
    %c0_i32_0 = arith.constant 0 : i32
    %c0_i32_1 = arith.constant 0 : i32
    return %c0_i32, %c0_i32_0 : i32, i32
  }
  func.func @transform_8(%arg0: i32) -> (i32, i32) {
    %c0_i32 = arith.constant 0 : i32
    %c0_i32_0 = arith.constant 0 : i32
    %c0_i32_1 = arith.constant 0 : i32
    return %c0_i32, %c0_i32_0 : i32, i32
  }
  func.func @transform_9(%arg0: i32) -> (i32, i32) {
    %c0_i32 = arith.constant 0 : i32
    %c0_i32_0 = arith.constant 0 : i32
    %c0_i32_1 = arith.constant 0 : i32
    return %c0_i32, %c0_i32_0 : i32, i32
  }
  func.func @transform_10(%arg0: i32) -> (i32, i32) {
    %c0_i32 = arith.constant 0 : i32
    %c0_i32_0 = arith.constant 0 : i32
    %c0_i32_1 = arith.constant 0 : i32
    return %c0_i32, %c0_i32_0 : i32, i32
  }
  func.func @transform_11(%arg0: i32) -> (i32, i32) {
    %c0_i32 = arith.constant 0 : i32
    %c0_i32_0 = arith.constant 0 : i32
    return %c0_i32, %arg0 : i32, i32
  }
}

</mosaic_0001>

<bundles_post_ra>
// kernel: relu_model_forward.1
= control target key start
LH: loop header
LB: loop body
LE: loop exit
PB: predicated region body
PF: predicated region fallthrough
CT: control target
= control target key end

     0   :  { %s3231_s19 = smov 0   ;;  %s3998_s0 = inlined_call_operand.vmem [shape: f32[1,256], index: 0, kind: input, shape index: {}]   ;;  %s3999_s1 = inlined_call_operand.vmem [shape: bf16[64,1], index: 1, kind: input, shape index: {}]   ;;  %s4000_s2 = inlined_call_operand.vmem [shape: bf16[64,1], index: 2, kind: input, shape index: {}]   ;;  %s4001_s3 = inlined_call_operand.vmem [shape: bf16[128,64], index: 3, kind: input, shape index: {}]   ;;  %s4002_s4 = inlined_call_operand.vmem [shape: bf16[128,1], index: 4, kind: input, shape index: {}]   ;;  %s4003_s5 = inlined_call_operand.vmem [shape: bf16[256,128], index: 5, kind: input, shape index: {}]   ;;  %s4004_s6 = inlined_call_operand.vmem [shape: bf16[256,1], index: 6, kind: input, shape index: {}]   ;;  %s4005_s7 = inlined_call_operand.vmem [shape: bf16[128,256], index: 7, kind: input, shape index: {}]   ;;  %s4006_s8 = inlined_call_operand.vmem [shape: bf16[128,1], index: 8, kind: input, shape index: {}]   ;;  %s4007_s9 = inlined_call_operand.vmem [shape: bf16[128,1], index: 9, kind: input, shape index: {}]   ;;  %s4008_s10 = inlined_call_operand.<no memory space> [shape: f32[1,1], index: 10, kind: input, shape index: {}]   ;;  %s4009_s11 = inlined_call_operand.vmem [shape: f32[1,256], index: 11, kind: output, shape index: {}]  }
   0x1   :  { %v16_v0 = vstv %s4008_s10 }
   0x2   :  { %17 = vst [vmem:[#allocation2] sm:$0x1] %v16_v0 }
   0x3 LB: > { %s2802_s20 = sadd.s32 4294967295, %s3164_s19   ;;  %p2806_p0 = scmp.ge.s32.totalorder %s3164_s19, 1  ;;  %s3164_s19 = sphi %s3231_s19, %s23_s19  }
   0x4   : > { %p337_p1 = scmp.lt.s32.totalorder %s3164_s19, 3 }
   0x6   : > { %p338_p2 = pnand %p2806_p0, %p337_p1 }
   0x7   : > { %v505_v1 = vld [vmem:[%s4000_s2] sm:$0xf] (!%p338_p2)  ;;  %v3166_v3 = vmov (!%p338_p2), 0   ;;  %v506_v4 = vld [vmem:[%s4000_s2 + $0x4] sm:$0xf] (!%p338_p2)  ;;  %vm705_vm0 = vcmask (!%p338_p2), 523264   ;;  %v398_v61 = vlaneseq (!%p338_p2) }
   0x8   : > { %341 = sbr.rel (%p338_p2) target bundleno = 1015 (0x3f7), region = 64  ;;  %v382_v2 = vld [vmem:[%s3999_s1] sm:$0xf] (!%p338_p2)  ;;  %3109 = vset.pattern.permute.xlu1 (!%p338_p2), %v3166_v3  ;;  %3108 = vset.pattern.permute.xlu0 (!%p338_p2), %v3166_v3  ;;  %v383_v5 = vld [vmem:[%s3999_s1 + $0x4] sm:$0xf] (!%p338_p2)  ;;  %p373_p3 = scmp.lt.s32.totalorder (!%p338_p2), %s2802_s20, 1 }
   0x9   : > { %515 = vperm.xlu1 (!%p338_p2), %3109, %v505_v1   ;;  %392 = vperm.xlu0 (!%p338_p2), %3108, %v382_v2   ;;  %v385_v6 = vld [vmem:[%s3999_s1 + $0xc] sm:$0xf] (!%p338_p2)  ;;  %v384_v7 = vld [vmem:[%s3999_s1 + $0x8] sm:$0xf] (!%p338_p2)  ;;  %v387_v10 = vld [vmem:[%s3999_s1 + $0x14] sm:$0xf] (!%p338_p2) }
   0xa   : > { %v508_v8 = vld [vmem:[%s4000_s2 + $0xc] sm:$0xf] (!%p338_p2)  ;;  %v507_v9 = vld [vmem:[%s4000_s2 + $0x8] sm:$0xf] (!%p338_p2)  ;;  %v386_v11 = vld [vmem:[%s3999_s1 + $0x10] sm:$0xf] (!%p338_p2) }
   0xb   : > { %v510_v12 = vld [vmem:[%s4000_s2 + $0x14] sm:$0xf] (!%p338_p2)  ;;  %v509_v13 = vld [vmem:[%s4000_s2 + $0x10] sm:$0xf] (!%p338_p2)  ;;  %v389_v14 = vld [vmem:[%s3999_s1 + $0x1c] sm:$0xf] (!%p338_p2) }
   0xc   : > { %v388_v15 = vld [vmem:[%s3999_s1 + $0x18] sm:$0xf] (!%p338_p2)  ;;  %v512_v16 = vld [vmem:[%s4000_s2 + $0x1c] sm:$0xf] (!%p338_p2)  ;;  %v836_v18 = vld [vmem:[%s4002_s4 + $0x4] sm:$0xf] (!%p338_p2) }
   0xd   : > { %527 = vperm.xlu1 (!%p338_p2), %3109, %v506_v4   ;;  %404 = vperm.xlu0 (!%p338_p2), %3108, %v383_v5   ;;  %v511_v17 = vld [vmem:[%s4000_s2 + $0x18] sm:$0xf] (!%p338_p2)  ;;  %v835_v19 = vld [vmem:[%s4002_s4] sm:$0xf] (!%p338_p2)  ;;  %v838_v20 = vld [vmem:[%s4002_s4 + $0xc] sm:$0xf] (!%p338_p2) }
   0xe   : > { %v837_v21 = vld [vmem:[%s4002_s4 + $0x8] sm:$0xf] (!%p338_p2)  ;;  %v840_v22 = vld [vmem:[%s4002_s4 + $0x14] sm:$0xf] (!%p338_p2)  ;;  %v839_v23 = vld [vmem:[%s4002_s4 + $0x10] sm:$0xf] (!%p338_p2) }
   0xf   : > { %v3110_v24 = vld [vmem:[%s4001_s3] sm:$0xff]   ;;  %v842_v25 = vld [vmem:[%s4002_s4 + $0x1c] sm:$0xf]  ;;  %v841_v26 = vld [vmem:[%s4002_s4 + $0x18] sm:$0xf]  ;;  %s4011_s20 = smov (!%p373_p3, %s2802_s20), 1 }
  0x10   : > { %3018 = vmatprep.mubr.msk.bf16.mxu0 %vm705_vm0, %v3110_v24  ;;  %v844_v27 = vld [vmem:[%s4002_s4 + $0x24] sm:$0xf]  ;;  %v843_v28 = vld [vmem:[%s4002_s4 + $0x20] sm:$0xf]  ;;  %v846_v29 = vld [vmem:[%s4002_s4 + $0x2c] sm:$0xf]  ;;  %s375_s28 = scalar_lea.vmem %s3998_s0, %s4011_s20  ;;  %s378_s27 = scalar_lea.vmem %s4009_s11, %s4011_s20 }
  0x11   : > { %428 = vperm.xlu1 %3109, %v385_v6   ;;  %416 = vperm.xlu0 %3108, %v384_v7   ;;  %v845_v30 = vld [vmem:[%s4002_s4 + $0x28] sm:$0xf]  ;;  %v848_v31 = vld [vmem:[%s4002_s4 + $0x34] sm:$0xf]  ;;  %v847_v32 = vld [vmem:[%s4002_s4 + $0x30] sm:$0xf] }
  0x12   : > { %v850_v33 = vld [vmem:[%s4002_s4 + $0x3c] sm:$0xf]  ;;  %v849_v34 = vld [vmem:[%s4002_s4 + $0x38] sm:$0xf]  ;;  %v1429_v35 = vld [vmem:[%s4004_s6 + $0x44] sm:$0xf] }
  0x13   : > { %v1428_v36 = vld [vmem:[%s4004_s6 + $0x40] sm:$0xf]  ;;  %v1413_v37 = vld [vmem:[%s4004_s6 + $0x4] sm:$0xf]  ;;  %v1431_v39 = vld [vmem:[%s4004_s6 + $0x4c] sm:$0xf] }
  0x14   : > { %v1412_v38 = vld [vmem:[%s4004_s6] sm:$0xf]  ;;  %v1430_v40 = vld [vmem:[%s4004_s6 + $0x48] sm:$0xf]  ;;  %v1415_v41 = vld [vmem:[%s4004_s6 + $0xc] sm:$0xf] }
  0x15   : > { %551 = vperm.xlu1 %3109, %v508_v8   ;;  %539 = vperm.xlu0 %3108, %v507_v9   ;;  %v1414_v42 = vld [vmem:[%s4004_s6 + $0x8] sm:$0xf]  ;;  %v1433_v43 = vld [vmem:[%s4004_s6 + $0x54] sm:$0xf]  ;;  %v1432_v44 = vld [vmem:[%s4004_s6 + $0x50] sm:$0xf] }
  0x16   : > { %v1417_v45 = vld [vmem:[%s4004_s6 + $0x14] sm:$0xf]  ;;  %v1416_v46 = vld [vmem:[%s4004_s6 + $0x10] sm:$0xf]  ;;  %v1435_v47 = vld [vmem:[%s4004_s6 + $0x5c] sm:$0xf] }
  0x17   : > { %v1434_v48 = vld [vmem:[%s4004_s6 + $0x58] sm:$0xf]  ;;  %v1419_v49 = vld [vmem:[%s4004_s6 + $0x1c] sm:$0xf]  ;;  %v1437_v51 = vld [vmem:[%s4004_s6 + $0x64] sm:$0xf] }
  0x18   : > { %v1418_v50 = vld [vmem:[%s4004_s6 + $0x18] sm:$0xf]  ;;  %v1436_v52 = vld [vmem:[%s4004_s6 + $0x60] sm:$0xf]  ;;  %v1421_v53 = vld [vmem:[%s4004_s6 + $0x24] sm:$0xf] }
  0x19   : > { %452 = vperm.xlu1 %3109, %v387_v10   ;;  %440 = vperm.xlu0 %3108, %v386_v11   ;;  %v1420_v54 = vld [vmem:[%s4004_s6 + $0x20] sm:$0xf]  ;;  %v1439_v55 = vld [vmem:[%s4004_s6 + $0x6c] sm:$0xf]  ;;  %v1438_v56 = vld [vmem:[%s4004_s6 + $0x68] sm:$0xf] }
  0x1a   : > { %v1423_v57 = vld [vmem:[%s4004_s6 + $0x2c] sm:$0xf]  ;;  %v1422_v58 = vld [vmem:[%s4004_s6 + $0x28] sm:$0xf]  ;;  %v1441_v59 = vld [vmem:[%s4004_s6 + $0x74] sm:$0xf] }
  0x1b   : > { %v1440_v60 = vld [vmem:[%s4004_s6 + $0x70] sm:$0xf]  ;;  %v380_v62 = vld [vmem:[%s375_s28] sm:$0x1]  ;;  %v1425_v63 = vld [vmem:[%s4004_s6 + $0x34] sm:$0xf] }
  0x1c   : > { %v1424_v0 = vld [vmem:[%s4004_s6 + $0x30] sm:$0xf]  ;;  %v3435_v1 = vshrl.u32 %v398_v61, 7  ;;  %v381_v2 = vpack.c.bf16 %v380_v62, %v380_v62  ;;  %v3167_v4 = vmov 839922192  }
  0x1d   : > { %575 = vperm.xlu1 %3109, %v510_v12   ;;  %563 = vperm.xlu0 %3108, %v509_v13   ;;  %v396_v5 = vunpack.c.l.s4 %v3167_v4  ;;  %v1443_v6 = vld [vmem:[%s4004_s6 + $0x7c] sm:$0xf]  ;;  %v1442_v7 = vld [vmem:[%s4004_s6 + $0x78] sm:$0xf] }
  0x1e   : > { %v491_v8 = vsub.s32 0, %v3435_v1  ;;  %v487_v9 = vpack.i.b16 %v381_v2, %v381_v2  ;;  %v1427_v11 = vld [vmem:[%s4004_s6 + $0x3c] sm:$0xf]  ;;  %v1426_v12 = vld [vmem:[%s4004_s6 + $0x38] sm:$0xf] }
  0x1f   : > { %v397_v10 = vunpack.c.0.s8 %v396_v5 }
  0x20   : > { %v492_v13 = vrot.slane %v487_v9, %v491_v8 }
  0x21   : > { %476 = vperm.xlu1 %3109, %v389_v14   ;;  %464 = vperm.xlu0 %3108, %v388_v15   ;;  %v3453_v14 = vsub.s32 %v397_v10, %v3435_v1  ;;  %v2158_v15 = vld [vmem:[%s4006_s8 + $0x4] sm:$0xf]  ;;  %v2165_v10 = vld [vmem:[%s4006_s8 + $0x20] sm:$0xf] }
  0x25   : > { %599 = vperm.xlu1 %3109, %v512_v16   ;;  %587 = vperm.xlu0 %3108, %v511_v17   ;;  %v2157_v16 = vld [vmem:[%s4006_s8] sm:$0xf]  ;;  %v3461_v17 = vcombine.low %v492_v13, %v492_v13 }
  0x29   : > { %865 = vperm.xlu1 %3109, %v836_v18   ;;  %853 = vperm.xlu0 %3108, %v835_v19  }
  0x2d   : > { %889 = vperm.xlu1 %3109, %v838_v20   ;;  %877 = vperm.xlu0 %3108, %v837_v21   ;;  %v2160_v21 = vld [vmem:[%s4006_s8 + $0xc] sm:$0xf] }
  0x31   : > { %913 = vperm.xlu1 %3109, %v840_v22   ;;  %901 = vperm.xlu0 %3108, %v839_v23   ;;  %v2159_v22 = vld [vmem:[%s4006_s8 + $0x8] sm:$0xf] }
  0x35   : > { %937 = vperm.xlu1 %3109, %v842_v25   ;;  %925 = vperm.xlu0 %3108, %v841_v26  }
  0x39   : > { %961 = vperm.xlu1 %3109, %v844_v27   ;;  %949 = vperm.xlu0 %3108, %v843_v28   ;;  %v2162_v28 = vld [vmem:[%s4006_s8 + $0x14] sm:$0xf] }
  0x3d   : > { %985 = vperm.xlu1 %3109, %v846_v29   ;;  %973 = vperm.xlu0 %3108, %v845_v30   ;;  %v2161_v29 = vld [vmem:[%s4006_s8 + $0x10] sm:$0xf] }
  0x41   : > { %1009 = vperm.xlu1 %3109, %v848_v31   ;;  %997 = vperm.xlu0 %3108, %v847_v32  }
  0x45   : > { %1033 = vperm.xlu1 %3109, %v850_v33   ;;  %1021 = vperm.xlu0 %3108, %v849_v34  }
  0x49   : > { %1650 = vperm.xlu1 %3109, %v1429_v35   ;;  %1638 = vperm.xlu0 %3108, %v1428_v36  }
  0x4d   : > { %1458 = vperm.xlu1 %3109, %v1413_v37   ;;  %1446 = vperm.xlu0 %3108, %v1412_v38   ;;  %v2430_v38 = vld [vmem:[%s4007_s9 + $0x4] sm:$0xf] }
  0x51   : > { %1674 = vperm.xlu1 %3109, %v1431_v39   ;;  %1662 = vperm.xlu0 %3108, %v1430_v40   ;;  %v2429_v39 = vld [vmem:[%s4007_s9] sm:$0xf] }
  0x55   : > { %1482 = vperm.xlu1 %3109, %v1415_v41   ;;  %1470 = vperm.xlu0 %3108, %v1414_v42  }
  0x59   : > { %1698 = vperm.xlu1 %3109, %v1433_v43   ;;  %1686 = vperm.xlu0 %3108, %v1432_v44  }
  0x5d   : > { %1506 = vperm.xlu1 %3109, %v1417_v45   ;;  %1494 = vperm.xlu0 %3108, %v1416_v46  }
  0x61   : > { %1722 = vperm.xlu1 %3109, %v1435_v47   ;;  %1710 = vperm.xlu0 %3108, %v1434_v48  }
  0x65   : > { %1530 = vperm.xlu1 %3109, %v1419_v49   ;;  %1518 = vperm.xlu0 %3108, %v1418_v50   ;;  %v2164_v49 = vld [vmem:[%s4006_s8 + $0x1c] sm:$0xf] }
  0x69   : > { %1746 = vperm.xlu1 %3109, %v1437_v51   ;;  %1734 = vperm.xlu0 %3108, %v1436_v52   ;;  %v2163_v52 = vld [vmem:[%s4006_s8 + $0x18] sm:$0xf] }
  0x6d   : > { %1554 = vperm.xlu1 %3109, %v1421_v53   ;;  %1542 = vperm.xlu0 %3108, %v1420_v54  }
  0x71   : > { %1770 = vperm.xlu1 %3109, %v1439_v55   ;;  %1758 = vperm.xlu0 %3108, %v1438_v56  }
  0x75   : > { %1578 = vperm.xlu1 %3109, %v1423_v57   ;;  %1566 = vperm.xlu0 %3108, %v1422_v58  }
  0x79   : > { %1794 = vperm.xlu1 %3109, %v1441_v59   ;;  %1782 = vperm.xlu0 %3108, %v1440_v60   ;;  %v2432_v59 = vld [vmem:[%s4007_s9 + $0xc] sm:$0xf]  ;;  %v2431_v60 = vld [vmem:[%s4007_s9 + $0x8] sm:$0xf] }
  0x7d   : > { %1602 = vperm.xlu1 %3109, %v1425_v63   ;;  %1590 = vperm.xlu0 %3108, %v1424_v0  }
  0x81   : > { %1818 = vperm.xlu1 %3109, %v1443_v6   ;;  %1806 = vperm.xlu0 %3108, %v1442_v7   ;;  %v2166_v6 = vld [vmem:[%s4006_s8 + $0x24] sm:$0xf] }
  0x85   : > { %1626 = vperm.xlu1 %3109, %v1427_v11   ;;  %1614 = vperm.xlu0 %3108, %v1426_v12  }
  0x88   : > { %v516_v18 = vpop.permute.xlu1 %515  ;;  %v393_v19 = vpop.permute.xlu0 %392 }
  0x89   : > { %v401_v20 = vrot.slane %v393_v19, %v3453_v14  ;;  %2187 = vperm.xlu1 %3109, %v2158_v15   ;;  %2175 = vperm.xlu0 %3108, %v2157_v16   ;;  %v524_v26 = vrot.slane %v516_v18, %v3453_v14  ;;  %v2434_v19 = vld [vmem:[%s4007_s9 + $0x14] sm:$0xf] }
  0x8b   : > { %v497_v23 = vmul.bf16 %v3461_v17, %v401_v20  ;;  %v2433_v20 = vld [vmem:[%s4007_s9 + $0x10] sm:$0xf] }
  0x8c   : > { %v528_v24 = vpop.permute.xlu1 %527  ;;  %v405_v25 = vpop.permute.xlu0 %404 }
  0x8d   : > { %v413_v27 = vrot.slane %v405_v25, %v3453_v14  ;;  %2211 = vperm.xlu1 %3109, %v2160_v21   ;;  %2199 = vperm.xlu0 %3108, %v2159_v22   ;;  %v609_v30 = vadd.bf16 %v524_v26, %v497_v23  ;;  %v536_v31 = vrot.slane %v528_v24, %v3453_v14 }
  0x8f   : > { %v498_v32 = vmul.bf16 %v3461_v17, %v413_v27  ;;  %v617_v40 = vmax.bf16 %v3166_v3, %v609_v30 }
  0x90   : > { %v429_v33 = vpop.permute.xlu1 %428  ;;  %v417_v34 = vpop.permute.xlu0 %416 }
  0x91   : > { %v610_v35 = vadd.bf16 %v536_v31, %v498_v32  ;;  %v437_v36 = vrot.slane %v429_v33, %v3453_v14  ;;  %v425_v37 = vrot.slane %v417_v34, %v3453_v14  ;;  %2235 = vperm.xlu1 %3109, %v2162_v28   ;;  %2223 = vperm.xlu0 %3108, %v2161_v29   ;;  %v2168_v28 = vld [vmem:[%s4006_s8 + $0x2c] sm:$0xf]  ;;  %v2167_v31 = vld [vmem:[%s4006_s8 + $0x28] sm:$0xf]  ;;  %v2436_v33 = vld [vmem:[%s4007_s9 + $0x1c] sm:$0xf] }
  0x92   : > { %v2435_v34 = vld [vmem:[%s4007_s9 + $0x18] sm:$0xf] }
  0x93   : > { %v618_v41 = vmax.bf16 %v3166_v3, %v610_v35  ;;  %v500_v42 = vmul.bf16 %v3461_v17, %v437_v36  ;;  %v499_v43 = vmul.bf16 %v3461_v17, %v425_v37  ;;  %v3111_v36 = vld [vmem:[%s4001_s3 + $0x8] sm:$0xff]   ;;  %v2170_v37 = vld [vmem:[%s4006_s8 + $0x34] sm:$0xf] }
  0x94   : > { %v552_v44 = vpop.permute.xlu1 %551  ;;  %v540_v45 = vpop.permute.xlu0 %539 }
  0x95   : > { %v560_v46 = vrot.slane %v552_v44, %v3453_v14  ;;  %v548_v47 = vrot.slane %v540_v45, %v3453_v14  ;;  %2459 = vperm.xlu1 %3109, %v2430_v38   ;;  %2447 = vperm.xlu0 %3108, %v2429_v39   ;;  %v2816_v48 = vcombine.low %v617_v40, %v618_v41  ;;  %v3112_v38 = vld [vmem:[%s4001_s3 + $0x10] sm:$0xff]   ;;  %v2438_v40 = vld [vmem:[%s4007_s9 + $0x24] sm:$0xf]  ;;  %v2437_v41 = vld [vmem:[%s4007_s9 + $0x20] sm:$0xf] }
  0x96   : > { %v2169_v39 = vld [vmem:[%s4006_s8 + $0x30] sm:$0xf]  ;;  %v3114_v44 = vld [vmem:[%s4001_s3 + $0x20] sm:$0xff]   ;;  %v2171_v45 = vld [vmem:[%s4006_s8 + $0x38] sm:$0xf] }
  0x97   : > { %v612_v50 = vadd.bf16 %v560_v46, %v500_v42  ;;  %v611_v51 = vadd.bf16 %v548_v47, %v499_v43  ;;  %3010 = vmatprep.subr.bf16.mxu0 %v2816_v48  ;;  %v3113_v42 = vld [vmem:[%s4001_s3 + $0x18] sm:$0xff]   ;;  %v2440_v46 = vld [vmem:[%s4007_s9 + $0x2c] sm:$0xf]  ;;  %v2439_v47 = vld [vmem:[%s4007_s9 + $0x28] sm:$0xf] }
  0x98   : > { %v453_v53 = vpop.permute.xlu1 %452  ;;  %v441_v54 = vpop.permute.xlu0 %440  ;;  %3011 = vmatpush3.bf16.msra.mxu0 %v2816_v48  ;;  %v2172_v43 = vld [vmem:[%s4006_s8 + $0x3c] sm:$0xf]  ;;  %v3115_v48 = vld [vmem:[%s4001_s3 + $0x28] sm:$0xff]  }
  0x99   : > { %v620_v55 = vmax.bf16 %v3166_v3, %v612_v50  ;;  %v619_v56 = vmax.bf16 %v3166_v3, %v611_v51  ;;  %v461_v57 = vrot.slane %v453_v53, %v3453_v14  ;;  %v449_v58 = vrot.slane %v441_v54, %v3453_v14  ;;  %2259 = vperm.xlu1 %3109, %v2164_v49   ;;  %v2442_v49 = vld [vmem:[%s4007_s9 + $0x34] sm:$0xf]  ;;  %v2441_v51 = vld [vmem:[%s4007_s9 + $0x30] sm:$0xf]  ;;  %v2443_v53 = vld [vmem:[%s4007_s9 + $0x38] sm:$0xf] }
  0x9a   : > { %2247 = vperm.xlu0 %3108, %v2163_v52   ;;  %v3116_v50 = vld [vmem:[%s4001_s3 + $0x30] sm:$0xff]   ;;  %v2444_v52 = vld [vmem:[%s4007_s9 + $0x3c] sm:$0xf] }
  0x9b   : > { %v2817_v61 = vcombine.low %v619_v56, %v620_v55  ;;  %v502_v62 = vmul.bf16 %v3461_v17, %v461_v57  ;;  %v501_v2 = vmul.bf16 %v3461_v17, %v449_v58  ;;  %v3117_v54 = vld [vmem:[%s4001_s3 + $0x38] sm:$0xff]   ;;  %v2746_v55 = vld [vmem:[#allocation2] sm:$0x1] }
  0x9c   : > { %v576_v63 = vpop.permute.xlu1 %575  ;;  %v564_v0 = vpop.permute.xlu0 %563  ;;  %v3118_v56 = vld [vmem:[%s4003_s5] sm:$0xff]  }
  0x9d   : > { %v584_v4 = vrot.slane %v576_v63, %v3453_v14  ;;  %v572_v5 = vrot.slane %v564_v0, %v3453_v14  ;;  %2483 = vperm.xlu1 %3109, %v2432_v59   ;;  %3012 = vmatprep.subr.bf16.mxu0 %v2817_v61 }
  0x9e   : > { %2471 = vperm.xlu0 %3108, %v2431_v60   ;;  %3013 = vmatpush3.bf16.msra.mxu0 %v2817_v61 }
  0x9f   : > { %v614_v7 = vadd.bf16 %v584_v4, %v502_v62  ;;  %v613_v9 = vadd.bf16 %v572_v5, %v501_v2  ;;  %3050 = vmatprep.mubr.bf16.mxu1 %v3118_v56 }
  0xa0   : > { %v477_v11 = vpop.permute.xlu1 %476  ;;  %v465_v12 = vpop.permute.xlu0 %464 }
  0xa1   : > { %v622_v13 = vmax.bf16 %v3166_v3, %v614_v7  ;;  %v621_v15 = vmax.bf16 %v3166_v3, %v613_v9  ;;  %v485_v16 = vrot.slane %v477_v11, %v3453_v14  ;;  %v473_v18 = vrot.slane %v465_v12, %v3453_v14  ;;  %2283 = vperm.xlu1 %3109, %v2166_v6  }
  0xa2   : > { %2271 = vperm.xlu0 %3108, %v2165_v10  }
  0xa3   : > { %v2818_v21 = vcombine.low %v621_v15, %v622_v13  ;;  %v504_v22 = vmul.bf16 %v3461_v17, %v485_v16  ;;  %v503_v25 = vmul.bf16 %v3461_v17, %v473_v18 }
  0xa4   : > { %v600_v23 = vpop.permute.xlu1 %599  ;;  %v588_v24 = vpop.permute.xlu0 %587 }
  0xa5   : > { %v608_v26 = vrot.slane %v600_v23, %v3453_v14  ;;  %v596_v27 = vrot.slane %v588_v24, %v3453_v14  ;;  %2507 = vperm.xlu1 %3109, %v2434_v19   ;;  %3014 = vmatprep.subr.bf16.mxu0 %v2818_v21 }
  0xa6   : > { %2495 = vperm.xlu0 %3108, %v2433_v20   ;;  %3015 = vmatpush3.bf16.msra.mxu0 %v2818_v21 }
  0xa7   : > { %v616_v29 = vadd.bf16 %v608_v26, %v504_v22  ;;  %v615_v30 = vadd.bf16 %v596_v27, %v503_v25 }
  0xa8   : > { %v866_v57 = vpop.permute.xlu1 %865  ;;  %v854_v58 = vpop.permute.xlu0 %853 }
  0xa9   : > { %v624_v17 = vmax.bf16 %v3166_v3, %v616_v29  ;;  %v623_v32 = vmax.bf16 %v3166_v3, %v615_v30  ;;  %2307 = vperm.xlu1 %3109, %v2168_v28   ;;  %v874_v2 = vrot.slane %v866_v57, %v3453_v14  ;;  %v862_v4 = vrot.slane %v854_v58, %v3453_v14 }
  0xaa   : > { %2295 = vperm.xlu0 %3108, %v2167_v31  }
  0xab   : > { %v2819_v35 = vcombine.low %v623_v32, %v624_v17  ;;  %v2828_v16 = vcombine.low %v862_v4, %v874_v2 }
  0xac   : > { %v890_v59 = vpop.permute.xlu1 %889  ;;  %v878_v60 = vpop.permute.xlu0 %877 }
  0xad   : > { %2531 = vperm.xlu1 %3109, %v2436_v33   ;;  %3016 = vmatprep.subr.bf16.mxu0 %v2819_v35  ;;  %v898_v5 = vrot.slane %v890_v59, %v3453_v14  ;;  %v886_v6 = vrot.slane %v878_v60, %v3453_v14 }
  0xae   : > { %2519 = vperm.xlu0 %3108, %v2435_v34   ;;  %3017 = vmatpush3.bf16.msra.mxu0 %v2819_v35 }
  0xaf   : > { %v2829_v18 = vcombine.low %v886_v6, %v898_v5 }
  0xb0   : > { %v914_v61 = vpop.permute.xlu1 %913  ;;  %v902_v62 = vpop.permute.xlu0 %901 }
  0xb1   : > { %2331 = vperm.xlu1 %3109, %v2170_v37   ;;  %3019 = vmatmul.mubr.msk.bf16.vlgmr.msra.gmra.mrb[0].mxu0 %vm705_vm0, %v3111_v36  ;;  %v922_v22 = vrot.slane %v914_v61, %v3453_v14  ;;  %v910_v23 = vrot.slane %v902_v62, %v3453_v14 }
  0xb2   : > { %2319 = vperm.xlu0 %3108, %v2169_v39   ;;  %3022 = vmatprep.mubr.msk.bf16.mxu0 %vm705_vm0, %v3112_v38 }
  0xb3   : > { %v2830_v34 = vcombine.low %v910_v23, %v922_v22  ;;  %v3123_v22 = vld [vmem:[%s4003_s5 + $0x28] sm:$0xff]   ;;  %v3124_v23 = vld [vmem:[%s4003_s5 + $0x30] sm:$0xff]  }
  0xb4   : > { %v938_v63 = vpop.permute.xlu1 %937  ;;  %v926_v0 = vpop.permute.xlu0 %925 }
  0xb5   : > { %2555 = vperm.xlu1 %3109, %v2438_v40   ;;  %v946_v24 = vrot.slane %v938_v63, %v3453_v14  ;;  %v934_v25 = vrot.slane %v926_v0, %v3453_v14 }
  0xb6   : > { %2543 = vperm.xlu0 %3108, %v2437_v41  }
  0xb7   : > { %v2831_v35 = vcombine.low %v934_v25, %v946_v24  ;;  %v3125_v24 = vld [vmem:[%s4003_s5 + $0x38] sm:$0xff]   ;;  %v3126_v25 = vld [vmem:[%s4003_s5 + $0x40] sm:$0xff]  }
  0xb8   : > { %v962_v10 = vpop.permute.xlu1 %961  ;;  %v950_v12 = vpop.permute.xlu0 %949 }
  0xb9   : > { %2355 = vperm.xlu1 %3109, %v2172_v43   ;;  %3023 = vmatmul.mubr.msk.bf16.gmra.mrb[4].mxu0 %vm705_vm0, %v3113_v42  ;;  %v970_v39 = vrot.slane %v962_v10, %v3453_v14  ;;  %v958_v42 = vrot.slane %v950_v12, %v3453_v14 }
  0xba   : > { %2343 = vperm.xlu0 %3108, %v2171_v45   ;;  %3026 = vmatprep.mubr.msk.bf16.mxu0 %vm705_vm0, %v3114_v44 }
  0xbc   : > { %v986_v26 = vpop.permute.xlu1 %985  ;;  %v974_v29 = vpop.permute.xlu0 %973 }
  0xbd   : > { %2579 = vperm.xlu1 %3109, %v2440_v46   ;;  %v994_v43 = vrot.slane %v986_v26, %v3453_v14  ;;  %v982_v44 = vrot.slane %v974_v29, %v3453_v14  ;;  %v3127_v26 = vld [vmem:[%s4003_s5 + $0x48] sm:$0xff]   ;;  %v3130_v29 = vld [vmem:[%s4003_s5 + $0x60] sm:$0xff]  }
  0xbe   : > { %2567 = vperm.xlu0 %3108, %v2439_v47  }
  0xc0   : > { %v1010_v40 = vpop.permute.xlu1 %1009  ;;  %v998_v41 = vpop.permute.xlu0 %997 }
  0xc1   : > { %2603 = vperm.xlu1 %3109, %v2442_v49   ;;  %3027 = vmatmul.mubr.msk.bf16.gmra.mrb[8].mxu0 %vm705_vm0, %v3115_v48  ;;  %v1018_v59 = vrot.slane %v1010_v40, %v3453_v14  ;;  %v1006_v60 = vrot.slane %v998_v41, %v3453_v14 }
  0xc2   : > { %2591 = vperm.xlu0 %3108, %v2441_v51   ;;  %3030 = vmatprep.mubr.msk.bf16.mxu0 %vm705_vm0, %v3116_v50 }
  0xc4   : > { %v1022_v56 = vpop.permute.xlu0 %1021 }
  0xc5   : > { %2627 = vperm.xlu1 %3109, %v2444_v52   ;;  %v2832_v52 = vcombine.low %v958_v42, %v970_v39  ;;  %v1030_v62 = vrot.slane %v1022_v56, %v3453_v14 }
  0xc6   : > { %2615 = vperm.xlu0 %3108, %v2443_v53   ;;  %v2833_v53 = vcombine.low %v982_v44, %v994_v43 }
  0xc9   : > { %3031 = vmatmul.mubr.msk.bf16.gmra.mrb[12].mxu0 %vm705_vm0, %v3117_v54 }
  0xca   : > { %2749 = vperm.xlu0 %3108, %v2746_v55   ;;  %v1034_v55 = vpop.permute.xlu1 %1033 }
  0xcb   : > { %v1042_v61 = vrot.slane %v1034_v55, %v3453_v14 }
  0xcd   : > { %v2835_v10 = vcombine.low %v1030_v62, %v1042_v61 }
 0x184   : > { %v3020_v7 = vpop.f32.mrb[0].mxu0 }
 0x185   : > { %v764_v9 = vpop.f32.mrb[1].mxu0 }
 0x186   : > { %v3021_v11 = vpop.f32.mrb[2].mxu0 }
 0x187   : > { %v828_v13 = vpack.c.bf16 %v3021_v11, %v3020_v7  ;;  %v767_v15 = vpop.f32.mrb[3].mxu0 }
 0x188   : > { %v827_v19 = vpack.c.bf16 %v767_v15, %v764_v9  ;;  %v2834_v9 = vcombine.low %v1006_v60, %v1018_v59 }
 0x189   : > { %v1092_v20 = vadd.bf16 %v2829_v18, %v828_v13  ;;  %v3119_v18 = vld [vmem:[%s4003_s5 + $0x8] sm:$0xff]  }
 0x18a   : > { %v1091_v21 = vadd.bf16 %v2828_v16, %v827_v19  ;;  %v3120_v19 = vld [vmem:[%s4003_s5 + $0x10] sm:$0xff]  }
 0x18b   : > { %v1100_v17 = vmax.bf16 %v3166_v3, %v1092_v20  ;;  %v3121_v20 = vld [vmem:[%s4003_s5 + $0x18] sm:$0xff]  }
 0x18c   : > { %v3024_v27 = vpop.f32.mrb[4].mxu0  ;;  %v1099_v28 = vmax.bf16 %v3166_v3, %v1091_v21  ;;  %v3122_v21 = vld [vmem:[%s4003_s5 + $0x20] sm:$0xff]  }
 0x18d   : > { %v780_v30 = vpop.f32.mrb[5].mxu0 }
 0x18e   : > { %v3025_v31 = vpop.f32.mrb[6].mxu0  ;;  %3034 = vmatprep.subr.bf16.mxu1 %v1099_v28 }
 0x18f   : > { %v830_v32 = vpack.c.bf16 %v3025_v31, %v3024_v27  ;;  %v783_v33 = vpop.f32.mrb[7].mxu0  ;;  %3035 = vmatpush3.bf16.msra.mxu1 %v1099_v28  ;;  %v3128_v27 = vld [vmem:[%s4003_s5 + $0x50] sm:$0xff]   ;;  %v3129_v28 = vld [vmem:[%s4003_s5 + $0x58] sm:$0xff]  }
 0x190   : > { %v829_v36 = vpack.c.bf16 %v783_v33, %v780_v30  ;;  %3036 = vmatprep.subr.bf16.mxu1 %v1100_v17  ;;  %v3131_v30 = vld [vmem:[%s4003_s5 + $0x68] sm:$0xff]   ;;  %v3132_v31 = vld [vmem:[%s4003_s5 + $0x70] sm:$0xff]  }
 0x191   : > { %v1094_v37 = vadd.bf16 %v2831_v35, %v830_v32  ;;  %v3136_v32 = vld [vmem:[%s4005_s7 + $0x4] ss:$8 sps:$4 sm:$0xff]   ;;  %v3139_v33 = vld [vmem:[%s4005_s7 + $0x74] ss:$8 sps:$4 sm:$0xff]   ;;  %v1639_v35 = vpop.permute.xlu0 %1638 }
 0x192   : > { %v1093_v38 = vadd.bf16 %v2830_v34, %v829_v36  ;;  %2084 = vmatprep.mubr.bf16.mxu0 %v3136_v32  ;;  %v3691_v34 = vpop.permute.xlu1 %1650 }
 0x193   : > { %3037 = vmatpush3.bf16.msra.mxu1 %v1100_v17  ;;  %v1102_v49 = vmax.bf16 %v3166_v3, %v1094_v37  ;;  %v3133_v17 = vld [vmem:[%s4003_s5 + $0x78] sm:$0xff]  }
 0x194   : > { %v3028_v45 = vpop.f32.mrb[8].mxu0  ;;  %v1101_v46 = vmax.bf16 %v3166_v3, %v1093_v38 }
 0x195   : > { %v796_v47 = vpop.f32.mrb[9].mxu0  ;;  %v1447_v37 = vpop.permute.xlu0 %1446 }
 0x196   : > { %v3029_v48 = vpop.f32.mrb[10].mxu0  ;;  %3038 = vmatprep.subr.bf16.mxu1 %v1101_v46  ;;  %v1459_v36 = vpop.permute.xlu1 %1458 }
 0x197   : > { %v832_v50 = vpack.c.bf16 %v3029_v48, %v3028_v45  ;;  %v799_v51 = vpop.f32.mrb[11].mxu0  ;;  %3039 = vmatpush3.bf16.msra.mxu1 %v1101_v46 }
 0x198   : > { %v831_v54 = vpack.c.bf16 %v799_v51, %v796_v47  ;;  %3040 = vmatprep.subr.bf16.mxu1 %v1102_v49 }
 0x199   : > { %v1096_v57 = vadd.bf16 %v2833_v53, %v832_v50  ;;  %v1663_v39 = vpop.permute.xlu0 %1662 }
 0x19a   : > { %v1095_v58 = vadd.bf16 %v2832_v52, %v831_v54  ;;  %v1675_v38 = vpop.permute.xlu1 %1674 }
 0x19b   : > { %3041 = vmatpush3.bf16.msra.mxu1 %v1102_v49  ;;  %v1104_v5 = vmax.bf16 %v3166_v3, %v1096_v57 }
 0x19c   : > { %v3032_v63 = vpop.f32.mrb[12].mxu0  ;;  %v1103_v0 = vmax.bf16 %v3166_v3, %v1095_v58 }
 0x19d   : > { %v812_v2 = vpop.f32.mrb[13].mxu0  ;;  %v3695_v41 = vpop.permute.xlu0 %1470 }
 0x19e   : > { %v3033_v4 = vpop.f32.mrb[14].mxu0  ;;  %3042 = vmatprep.subr.bf16.mxu1 %v1103_v0  ;;  %v3693_v40 = vpop.permute.xlu1 %1482 }
 0x19f   : > { %v834_v6 = vpack.c.bf16 %v3033_v4, %v3032_v63  ;;  %v815_v7 = vpop.f32.mrb[15].mxu0  ;;  %3043 = vmatpush3.bf16.msra.mxu1 %v1103_v0  ;;  %v1491_v32 = vrot.slane %v3693_v40, %v3453_v14 }
 0x1a0   : > { %v833_v11 = vpack.c.bf16 %v815_v7, %v812_v2  ;;  %3044 = vmatprep.subr.bf16.mxu1 %v1104_v5 }
 0x1a1   : > { %v1098_v12 = vadd.bf16 %v2835_v10, %v834_v6  ;;  %v3699_v43 = vpop.permute.xlu0 %1686 }
 0x1a2   : > { %v1097_v13 = vadd.bf16 %v2834_v9, %v833_v11  ;;  %v3697_v42 = vpop.permute.xlu1 %1698 }
 0x1a3   : > { %3045 = vmatpush3.bf16.msra.mxu1 %v1104_v5  ;;  %v1106_v16 = vmax.bf16 %v3166_v3, %v1098_v12 }
 0x1a4   : > { %v1105_v15 = vmax.bf16 %v3166_v3, %v1097_v13 }
 0x1a5   : > { %v3703_v45 = vpop.permute.xlu0 %1494 }
 0x1a6   : > { %3046 = vmatprep.subr.bf16.mxu1 %v1105_v15  ;;  %v3701_v44 = vpop.permute.xlu1 %1506 }
 0x1a7   : > { %3047 = vmatpush3.bf16.msra.mxu1 %v1105_v15 }
 0x1a8   : > { %3048 = vmatprep.subr.bf16.mxu1 %v1106_v16 }
 0x1a9   : > { %v3709_v49 = vpop.permute.xlu0 %1710 }
 0x1aa   : > { %v3707_v47 = vpop.permute.xlu1 %1722 }
 0x1ab   : > { %3049 = vmatpush3.bf16.msra.mxu1 %v1106_v16 }
 0x1ad   : > { %v3717_v55 = vpop.permute.xlu0 %1518 }
 0x1ae   : > { %3051 = vmatmul.mubr.bf16.vlgmr.msra.gmra.mrb[0].mxu1 %v3119_v18  ;;  %v3715_v54 = vpop.permute.xlu1 %1530 }
 0x1af   : > { %3054 = vmatprep.mubr.bf16.mxu1 %v3120_v19 }
 0x1b1   : > { %v3733_v63 = vpop.permute.xlu0 %1734 }
 0x1b2   : > { %v3731_v62 = vpop.permute.xlu1 %1746 }
 0x1b5   : > { %v3747_v9 = vpop.permute.xlu0 %1542 }
 0x1b6   : > { %3055 = vmatmul.mubr.bf16.gmra.mrb[4].mxu1 %v3121_v20  ;;  %v3741_v5 = vpop.permute.xlu1 %1554 }
 0x1b7   : > { %3058 = vmatprep.mubr.bf16.mxu1 %v3122_v21  ;;  %v1467_v21 = vrot.slane %v1459_v36, %v3453_v14 }
 0x1b9   : > { %v3757_v15 = vpop.permute.xlu0 %1758 }
 0x1ba   : > { %v3753_v12 = vpop.permute.xlu1 %1770 }
 0x1be   : > { %3059 = vmatmul.mubr.bf16.gmra.mrb[8].mxu1 %v3123_v22  ;;  %v1455_v22 = vrot.slane %v1447_v37, %v3453_v14 }
 0x1bf   : > { %3062 = vmatprep.mubr.bf16.mxu1 %v3124_v23  ;;  %v3769_v23 = vpop.permute.xlu1 %1578 }
 0x1c6   : > { %3063 = vmatmul.mubr.bf16.gmra.mrb[12].mxu1 %v3125_v24  ;;  %v1659_v24 = vrot.slane %v3691_v34, %v3453_v14 }
 0x1c7   : > { %3066 = vmatprep.mubr.bf16.mxu1 %v3126_v25  ;;  %v1647_v25 = vrot.slane %v1639_v35, %v3453_v14 }
 0x1c9   : > { %v2860_v37 = vcombine.low %v1647_v25, %v1659_v24  ;;  %v1695_v24 = vrot.slane %v3699_v43, %v3453_v14  ;;  %v1539_v43 = vrot.slane %v3715_v54, %v3453_v14 }
 0x1ce   : > { %3067 = vmatmul.mubr.bf16.gmra.mrb[16].mxu1 %v3127_v26  ;;  %v1683_v26 = vrot.slane %v1675_v38, %v3453_v14  ;;  %v3782_v38 = vpop.permute.xlu1 %1794 }
 0x1cf   : > { %3070 = vmatprep.mubr.bf16.mxu1 %v3128_v27  ;;  %v1671_v27 = vrot.slane %v1663_v39, %v3453_v14 }
 0x1d1   : > { %v2861_v35 = vcombine.low %v1671_v27, %v1683_v26 }
 0x1d6   : > { %3071 = vmatmul.mubr.bf16.gmra.mrb[20].mxu1 %v3129_v28  ;;  %v3776_v28 = vpop.permute.xlu0 %1566 }
 0x1d7   : > { %3074 = vmatprep.mubr.bf16.mxu1 %v3130_v29 }
 0x1de   : > { %3075 = vmatmul.mubr.bf16.gmra.mrb[24].mxu1 %v3131_v30 }
 0x1df   : > { %3078 = vmatprep.mubr.bf16.mxu1 %v3132_v31 }
 0x1e6   : > { %3079 = vmatmul.mubr.bf16.gmra.mrb[28].mxu1 %v3133_v17  ;;  %v2852_v17 = vcombine.low %v1455_v22, %v1467_v21 }
 0x1e7   : > { %2140 = vmatprep.mubr.bf16.mxu1 %v3139_v33  ;;  %v1479_v33 = vrot.slane %v3695_v41, %v3453_v14  ;;  %v1707_v41 = vrot.slane %v3697_v42, %v3453_v14 }
 0x1e9   : > { %v2853_v22 = vcombine.low %v1479_v33, %v1491_v32 }
 0x281   : > { %v3705_v46 = vpop.f32.mrb[0].mxu1 }
 0x282   : > { %v1269_v48 = vpop.f32.mrb[1].mxu1 }
 0x283   : > { %v3711_v50 = vpop.f32.mrb[2].mxu1 }
 0x284   : > { %v1397_v51 = vpack.c.bf16 %v3711_v50, %v3705_v46  ;;  %v1272_v52 = vpop.f32.mrb[3].mxu1  ;;  %v1503_v50 = vrot.slane %v3703_v45, %v3453_v14 }
 0x285   : > { %v1396_v53 = vpack.c.bf16 %v1272_v52, %v1269_v48  ;;  %v1515_v48 = vrot.slane %v3701_v44, %v3453_v14  ;;  %v3788_v52 = vpop.permute.xlu0 %1782  ;;  %v1719_v44 = vrot.slane %v3709_v49, %v3453_v14  ;;  %v3805_v49 = vpop.permute.xlu1 %1602 }
 0x286   : > { %v1925_v26 = vadd.bf16 %v2853_v22, %v1397_v51  ;;  %v2862_v51 = vcombine.low %v1695_v24, %v1707_v41 }
 0x287   : > { %v1924_v39 = vadd.bf16 %v2852_v17, %v1396_v53  ;;  %v1731_v53 = vrot.slane %v3707_v47, %v3453_v14  ;;  %v1527_v47 = vrot.slane %v3717_v55, %v3453_v14  ;;  %v1563_v55 = vrot.slane %v3741_v5, %v3453_v14 }
 0x289   : > { %v3719_v56 = vpop.f32.mrb[4].mxu1  ;;  %v1940_v27 = vmax.bf16 %v3166_v3, %v1924_v39  ;;  %v2863_v33 = vcombine.low %v1719_v44, %v1731_v53  ;;  %v1575_v53 = vrot.slane %v3776_v28, %v3453_v14 }
 0x28a   : > { %v3721_v57 = vpop.f32.mrb[5].mxu1 }
 0x28b   : > { %v3723_v58 = vpop.f32.mrb[6].mxu1 }
 0x28c   : > { %v1399_v59 = vpack.c.bf16 %v3723_v58, %v3719_v56  ;;  %v3727_v60 = vpop.f32.mrb[7].mxu1 }
 0x28d   : > { %v1398_v61 = vpack.c.bf16 %v3727_v60, %v3721_v57  ;;  %v1779_v57 = vrot.slane %v3753_v12, %v3453_v14  ;;  %v1767_v60 = vrot.slane %v3757_v15, %v3453_v14  ;;  %v1587_v15 = vrot.slane %v3769_v23, %v3453_v14 }
 0x28e   : > { %v1611_v23 = vrot.slane %v3805_v49, %v3453_v14 }
 0x28f   : > { %v2865_v58 = vcombine.low %v1767_v60, %v1779_v57 }
 0x291   : > { %v3735_v0 = vpop.f32.mrb[8].mxu1 }
 0x292   : > { %v3737_v2 = vpop.f32.mrb[9].mxu1 }
 0x293   : > { %v3739_v4 = vpop.f32.mrb[10].mxu1 }
 0x294   : > { %v1401_v6 = vpack.c.bf16 %v3739_v4, %v3735_v0  ;;  %v3745_v7 = vpop.f32.mrb[11].mxu1 }
 0x295   : > { %v1400_v10 = vpack.c.bf16 %v3745_v7, %v3737_v2 }
 0x299   : > { %v3751_v11 = vpop.f32.mrb[12].mxu1 }
 0x29a   : > { %v3755_v13 = vpop.f32.mrb[13].mxu1 }
 0x29b   : > { %v3759_v16 = vpop.f32.mrb[14].mxu1 }
 0x29c   : > { %v1403_v18 = vpack.c.bf16 %v3759_v16, %v3751_v11  ;;  %v3763_v19 = vpop.f32.mrb[15].mxu1  ;;  %v3137_v11 = vld [vmem:[%s4005_s7 + $0x70] ss:$8 sps:$4 sm:$0xff]   ;;  %v3140_v16 = vld [vmem:[%s4005_s7 + $0x14] ss:$8 sps:$4 sm:$0xff]  }
 0x29d   : > { %v1402_v20 = vpack.c.bf16 %v3763_v19, %v3755_v13  ;;  %v3134_v19 = vld [vmem:[%s4005_s7] ss:$8 sps:$4 sm:$0xff]  }
 0x2a1   : > { %v3068_v29 = vpop.f32.mrb[16].mxu1 }
 0x2a2   : > { %v1333_v30 = vpop.f32.mrb[17].mxu1 }
 0x2a3   : > { %v3069_v31 = vpop.f32.mrb[18].mxu1 }
 0x2a4   : > { %v1405_v36 = vpack.c.bf16 %v3069_v31, %v3068_v29  ;;  %v1336_v34 = vpop.f32.mrb[19].mxu1 }
 0x2a5   : > { %v1404_v46 = vpack.c.bf16 %v1336_v34, %v1333_v30  ;;  %v2854_v30 = vcombine.low %v1503_v50, %v1515_v48  ;;  %v2855_v48 = vcombine.low %v1527_v47, %v1539_v43  ;;  %v1755_v50 = vrot.slane %v3731_v62, %v3453_v14 }
 0x2a6   : > { %v1933_v40 = vadd.bf16 %v2861_v35, %v1405_v36  ;;  %v1591_v36 = vpop.permute.xlu0 %1590  ;;  %v1551_v35 = vrot.slane %v3747_v9, %v3453_v14  ;;  %v1819_v9 = vpop.permute.xlu1 %1818  ;;  %v1791_v43 = vrot.slane %v3788_v52, %v3453_v14 }
 0x2a7   : > { %v1932_v21 = vadd.bf16 %v2860_v37, %v1404_v46  ;;  %v1941_v37 = vmax.bf16 %v3166_v3, %v1925_v26  ;;  %v1926_v54 = vadd.bf16 %v2854_v30, %v1398_v61  ;;  %v1599_v28 = vrot.slane %v1591_v36, %v3453_v14 }
 0x2a8   : > { %v1949_v42 = vmax.bf16 %v3166_v3, %v1933_v40  ;;  %v1743_v40 = vrot.slane %v3733_v63, %v3453_v14  ;;  %v2856_v41 = vcombine.low %v1551_v35, %v1563_v55  ;;  %v2857_v30 = vcombine.low %v1575_v53, %v1587_v15 }
 0x2a9   : > { %v3072_v25 = vpop.f32.mrb[20].mxu1  ;;  %v1948_v45 = vmax.bf16 %v3166_v3, %v1932_v21  ;;  %v1927_v21 = vadd.bf16 %v2855_v48, %v1399_v59  ;;  %v1942_v62 = vmax.bf16 %v3166_v3, %v1926_v54  ;;  %v1827_v2 = vrot.slane %v1819_v9, %v3453_v14  ;;  %v3148_v9 = vld [vmem:[%s4005_s7 + $0x30] ss:$8 sps:$4 sm:$0xff]  }
 0x2aa   : > { %v1349_v29 = vpop.f32.mrb[21].mxu1  ;;  %v1807_v24 = vpop.permute.xlu0 %1806  ;;  %v2864_v56 = vcombine.low %v1743_v40, %v1755_v50  ;;  %v1928_v26 = vadd.bf16 %v2856_v41, %v1400_v10  ;;  %v3154_v41 = vld [vmem:[%s4005_s7 + $0x50] ss:$8 sps:$4 sm:$0xff]  }
 0x2ab   : > { %v3073_v31 = vpop.f32.mrb[22].mxu1  ;;  %2946 = vmatprep.subr.bf16.mxu0 %v1948_v45  ;;  %3082 = vmatprep.subr.bf16.mxu1 %v1948_v45  ;;  %v1943_v45 = vmax.bf16 %v3166_v3, %v1927_v21  ;;  %v1815_v7 = vrot.slane %v1807_v24, %v3453_v14  ;;  %v3149_v21 = vld [vmem:[%s4005_s7 + $0x44] ss:$8 sps:$4 sm:$0xff]  }
 0x2ac   : > { %v1407_v17 = vpack.c.bf16 %v3073_v31, %v3072_v25  ;;  %v1352_v32 = vpop.f32.mrb[23].mxu1  ;;  %2947 = vmatpush3.bf16.msra.mxu0 %v1940_v27  ;;  %3090 = vmatpush3.bf16.msra.mxu1 %v1940_v27  ;;  %v1803_v31 = vrot.slane %v3782_v38, %v3453_v14  ;;  %v1944_v38 = vmax.bf16 %v3166_v3, %v1928_v26  ;;  %v3155_v24 = vld [vmem:[%s4005_s7 + $0x64] ss:$8 sps:$4 sm:$0xff]  }
 0x2ad   : > { %v1406_v34 = vpack.c.bf16 %v1352_v32, %v1349_v29  ;;  %2948 = vmatprep.subr.bf16.mxu0 %v1949_v42  ;;  %3083 = vmatprep.subr.bf16.mxu1 %v1949_v42  ;;  %v1627_v42 = vpop.permute.xlu1 %1626  ;;  %v2867_v0 = vcombine.low %v1815_v7, %v1827_v2 }
 0x2ae   : > { %v1935_v46 = vadd.bf16 %v2863_v33, %v1407_v17  ;;  %v1615_v10 = vpop.permute.xlu0 %1614  ;;  %v1929_v17 = vadd.bf16 %v2857_v30, %v1401_v6  ;;  %v1635_v36 = vrot.slane %v1627_v42, %v3453_v14  ;;  %v2866_v55 = vcombine.low %v1791_v43, %v1803_v31 }
 0x2af   : > { %v1934_v39 = vadd.bf16 %v2862_v51, %v1406_v34  ;;  %v2858_v51 = vcombine.low %v1599_v28, %v1611_v23  ;;  %v1623_v34 = vrot.slane %v1615_v10, %v3453_v14 }
 0x2b0   : > { %2949 = vmatpush3.bf16.msra.mxu0 %v1941_v37  ;;  %3091 = vmatpush3.bf16.msra.mxu1 %v1941_v37  ;;  %v1951_v12 = vmax.bf16 %v3166_v3, %v1935_v46  ;;  %v1945_v6 = vmax.bf16 %v3166_v3, %v1929_v17 }
 0x2b1   : > { %v3076_v61 = vpop.f32.mrb[24].mxu1  ;;  %v1950_v5 = vmax.bf16 %v3166_v3, %v1934_v39  ;;  %v1930_v35 = vadd.bf16 %v2858_v51, %v1402_v20  ;;  %v2859_v48 = vcombine.low %v1623_v34, %v1635_v36  ;;  %v3143_v20 = vld [vmem:[%s4005_s7 + $0x24] ss:$8 sps:$4 sm:$0xff]  }
 0x2b2   : > { %v1365_v22 = vpop.f32.mrb[25].mxu1  ;;  %v2176_v15 = vpop.permute.xlu0 %2175 }
 0x2b3   : > { %v3077_v63 = vpop.f32.mrb[26].mxu1  ;;  %2950 = vmatprep.subr.bf16.mxu0 %v1950_v5  ;;  %3084 = vmatprep.subr.bf16.mxu1 %v1950_v5  ;;  %v1931_v40 = vadd.bf16 %v2859_v48, %v1403_v18  ;;  %v1946_v57 = vmax.bf16 %v3166_v3, %v1930_v35  ;;  %v3142_v18 = vld [vmem:[%s4005_s7 + $0x10] ss:$8 sps:$4 sm:$0xff]   ;;  %v3146_v5 = vld [vmem:[%s4005_s7 + $0x34] ss:$8 sps:$4 sm:$0xff]   ;;  %v2184_v43 = vrot.slane %v2176_v15, %v3453_v14 }
 0x2b4   : > { %v1409_v44 = vpack.c.bf16 %v3077_v63, %v3076_v61  ;;  %v1368_v25 = vpop.f32.mrb[27].mxu1  ;;  %2951 = vmatpush3.bf16.msra.mxu0 %v1942_v62  ;;  %3092 = vmatpush3.bf16.msra.mxu1 %v1942_v62  ;;  %v3145_v61 = vld [vmem:[%s4005_s7 + $0x20] ss:$8 sps:$4 sm:$0xff]  }
 0x2b5   : > { %v1408_v59 = vpack.c.bf16 %v1368_v25, %v1365_v22  ;;  %2952 = vmatprep.subr.bf16.mxu0 %v1951_v12  ;;  %3085 = vmatprep.subr.bf16.mxu1 %v1951_v12  ;;  %v1947_v13 = vmax.bf16 %v3166_v3, %v1931_v40  ;;  %v3151_v62 = vld [vmem:[%s4005_s7 + $0x40] ss:$8 sps:$4 sm:$0xff]   ;;  %v3152_v22 = vld [vmem:[%s4005_s7 + $0x54] ss:$8 sps:$4 sm:$0xff]   ;;  %v2188_v12 = vpop.permute.xlu1 %2187 }
 0x2b6   : > { %v1937_v27 = vadd.bf16 %v2865_v58, %v1409_v44  ;;  %v3157_v63 = vld [vmem:[%s4005_s7 + $0x60] ss:$8 sps:$4 sm:$0xff]   ;;  %v2200_v44 = vpop.permute.xlu0 %2199  ;;  %v2196_v42 = vrot.slane %v2188_v12, %v3453_v14 }
 0x2b7   : > { %v1936_v29 = vadd.bf16 %v2864_v56, %v1408_v59 }
 0x2b8   : > { %2953 = vmatpush3.bf16.msra.mxu0 %v1943_v45  ;;  %3093 = vmatpush3.bf16.msra.mxu1 %v1943_v45  ;;  %v1953_v52 = vmax.bf16 %v3166_v3, %v1937_v27 }
 0x2b9   : > { %v3080_v47 = vpop.f32.mrb[28].mxu1  ;;  %v1952_v49 = vmax.bf16 %v3166_v3, %v1936_v29  ;;  %v2212_v53 = vpop.permute.xlu1 %2211 }
 0x2ba   : > { %v1381_v32 = vpop.f32.mrb[29].mxu1  ;;  %v3909_v56 = vpop.permute.xlu0 %2223  ;;  %v2220_v35 = vrot.slane %v2212_v53, %v3453_v14 }
 0x2bb   : > { %v3081_v33 = vpop.f32.mrb[30].mxu1  ;;  %2954 = vmatprep.subr.bf16.mxu0 %v1952_v49  ;;  %3086 = vmatprep.subr.bf16.mxu1 %v1952_v49 }
 0x2bc   : > { %v1411_v37 = vpack.c.bf16 %v3081_v33, %v3080_v47  ;;  %v1384_v54 = vpop.f32.mrb[31].mxu1  ;;  %2955 = vmatpush3.bf16.msra.mxu0 %v1944_v38  ;;  %3094 = vmatpush3.bf16.msra.mxu1 %v1944_v38  ;;  %v2884_v33 = vcombine.low %v2184_v43, %v2196_v42 }
 0x2bd   : > { %v1410_v4 = vpack.c.bf16 %v1384_v54, %v1381_v32  ;;  %2956 = vmatprep.subr.bf16.mxu0 %v1953_v52  ;;  %3087 = vmatprep.subr.bf16.mxu1 %v1953_v52  ;;  %v3907_v25 = vpop.permute.xlu1 %2235 }
 0x2be   : > { %v1939_v46 = vadd.bf16 %v2867_v0, %v1411_v37  ;;  %v2448_v59 = vpop.permute.xlu0 %2447 }
 0x2bf   : > { %v1938_v39 = vadd.bf16 %v2866_v55, %v1410_v4 }
 0x2c0   : > { %2957 = vmatpush3.bf16.msra.mxu0 %v1945_v6  ;;  %3095 = vmatpush3.bf16.msra.mxu1 %v1945_v6  ;;  %v1955_v60 = vmax.bf16 %v3166_v3, %v1939_v46  ;;  %v2208_v46 = vrot.slane %v2200_v44, %v3453_v14 }
 0x2c1   : > { %v1954_v50 = vmax.bf16 %v3166_v3, %v1938_v39  ;;  %v2460_v58 = vpop.permute.xlu1 %2459 }
 0x2c2   : > { %v3913_v26 = vpop.permute.xlu0 %2247 }
 0x2c3   : > { %2958 = vmatprep.subr.bf16.mxu0 %v1954_v50  ;;  %3088 = vmatprep.subr.bf16.mxu1 %v1954_v50 }
 0x2c4   : > { %2959 = vmatpush3.bf16.msra.mxu0 %v1946_v57  ;;  %3096 = vmatpush3.bf16.msra.mxu1 %v1946_v57 }
 0x2c5   : > { %2960 = vmatprep.subr.bf16.mxu0 %v1955_v60  ;;  %3089 = vmatprep.subr.bf16.mxu1 %v1955_v60  ;;  %v3911_v45 = vpop.permute.xlu1 %2259 }
 0x2c6   : > { %v2472_v28 = vpop.permute.xlu0 %2471 }
 0x2c7   : > { %v2480_v44 = vrot.slane %v2472_v28, %v3453_v14  ;;  %v2256_v28 = vrot.slane %v3913_v26, %v3453_v14 }
 0x2c8   : > { %2961 = vmatpush3.bf16.msra.mxu0 %v1947_v13  ;;  %3097 = vmatpush3.bf16.msra.mxu1 %v1947_v13  ;;  %v2885_v13 = vcombine.low %v2208_v46, %v2220_v35 }
 0x2c9   : > { %v3915_v23 = vpop.permute.xlu1 %2483 }
 0x2ca   : > { %v3923_v51 = vpop.permute.xlu0 %2271  ;;  %v2492_v53 = vrot.slane %v3915_v23, %v3453_v14  ;;  %v2268_v23 = vrot.slane %v3911_v45, %v3453_v14 }
 0x2cb   : > { %2085 = vmatmul.mubr.bf16.vlgmr.msra.gmra.mrb[16].mxu0 %v3134_v19  ;;  %2141 = vmatmul.mubr.bf16.vlgmr.msra.gmra.mrb[32].mxu1 %v3137_v11  ;;  %v2468_v19 = vrot.slane %v2460_v58, %v3453_v14  ;;  %v2456_v11 = vrot.slane %v2448_v59, %v3453_v14 }
 0x2cc   : > { %2092 = vmatprep.mubr.bf16.mxu0 %v3140_v16 }
 0x2cd   : > { %v3925_v52 = vpop.permute.xlu1 %2283 }
 0x2ce   : > { %v2496_v39 = vpop.permute.xlu0 %2495 }
 0x2d1   : > { %v2508_v50 = vpop.permute.xlu1 %2507 }
 0x2d3   : > { %2093 = vmatmul.mubr.bf16.gmra.mrb[20].mxu0 %v3142_v18 }
 0x2d4   : > { %2100 = vmatprep.mubr.bf16.mxu0 %v3143_v20  ;;  %v3934_v20 = vpop.permute.xlu0 %2295 }
 0x2db   : > { %2101 = vmatmul.mubr.bf16.gmra.mrb[24].mxu0 %v3145_v61 }
 0x2dc   : > { %2108 = vmatprep.mubr.bf16.mxu0 %v3146_v5 }
 0x2e3   : > { %2109 = vmatmul.mubr.bf16.gmra.mrb[28].mxu0 %v3148_v9 }
 0x2e4   : > { %2116 = vmatprep.mubr.bf16.mxu0 %v3149_v21 }
 0x2eb   : > { %2117 = vmatmul.mubr.bf16.gmra.mrb[32].mxu0 %v3151_v62  ;;  %v2244_v62 = vrot.slane %v3907_v25, %v3453_v14 }
 0x2ec   : > { %2124 = vmatprep.mubr.bf16.mxu0 %v3152_v22  ;;  %v2232_v22 = vrot.slane %v3909_v56, %v3453_v14  ;;  %v2520_v56 = vpop.permute.xlu0 %2519 }
 0x2f3   : > { %2125 = vmatmul.mubr.bf16.gmra.mrb[36].mxu0 %v3154_v41  ;;  %v3940_v41 = vpop.permute.xlu1 %2307 }
 0x2f4   : > { %2132 = vmatprep.mubr.bf16.mxu0 %v3155_v24 }
 0x2fb   : > { %2133 = vmatmul.mubr.bf16.gmra.mrb[40].mxu0 %v3157_v63 }
 0x39e   : > { %v2962_v27 = vpop.f32.mrb[16].mxu0  ;;  %v3004_v29 = vpop.f32.mrb[32].mxu1 }
 0x39f   : > { %v2963_v30 = vpop.f32.mrb[17].mxu0  ;;  %v3005_v31 = vpop.f32.mrb[33].mxu1 }
 0x3a0   : > { %v2964_v2 = vadd.f32 %v2963_v30, %v2962_v27  ;;  %v3919_v7 = vadd.f32 %v3005_v31, %v3004_v29  ;;  %v2965_v10 = vpop.f32.mrb[18].mxu0  ;;  %v3007_v47 = vpop.f32.mrb[34].mxu1  ;;  %v2886_v30 = vcombine.low %v2232_v22, %v2244_v62 }
 0x3a1   : > { %v2966_v49 = vpop.f32.mrb[19].mxu0  ;;  %v3008_v17 = vpop.f32.mrb[35].mxu1 }
 0x3a2   : > { %v2967_v38 = vadd.f32 %v2966_v49, %v2965_v10  ;;  %v3921_v32 = vadd.f32 %v3008_v17, %v3007_v47 }
 0x3a4   : > { %v2149_v36 = vpack.c.bf16 %v2967_v38, %v2964_v2  ;;  %v2156_v34 = vpack.c.bf16 %v3921_v32, %v3919_v7  ;;  %v2532_v2 = vpop.permute.xlu1 %2531 }
 0x3a6   : > { %v2413_v37 = vadd.bf16 %v2884_v33, %v2149_v36  ;;  %v2968_v54 = vpop.f32.mrb[20].mxu0 }
 0x3a7   : > { %v2969_v55 = vpop.f32.mrb[21].mxu0 }
 0x3a8   : > { %v2421_v0 = vmax.bf16 %v3166_v3, %v2413_v37  ;;  %v2970_v4 = vadd.f32 %v2969_v55, %v2968_v54  ;;  %v2971_v6 = vpop.f32.mrb[22].mxu0  ;;  %v2516_v54 = vrot.slane %v2508_v50, %v3453_v14 }
 0x3a9   : > { %v2972_v48 = vpop.f32.mrb[23].mxu0 }
 0x3aa   : > { %v2892_v40 = vcombine.low %v2421_v0, %v2421_v0  ;;  %v2893_v57 = vcombine.high %v2421_v0, %v2421_v0  ;;  %v2973_v60 = vadd.f32 %v2972_v48, %v2971_v6  ;;  %v2504_v6 = vrot.slane %v2496_v39, %v3453_v14 }
 0x3ab   : > { %v2280_v39 = vrot.slane %v3923_v51, %v3453_v14 }
 0x3ac   : > { %v2150_v16 = vpack.c.bf16 %v2973_v60, %v2970_v4  ;;  %v2693_v61 = vmul.bf16 %v2892_v40, %v2456_v11  ;;  %v2694_v5 = vmul.bf16 %v2893_v57, %v2468_v19  ;;  %v3953_v40 = vpop.permute.xlu0 %2319  ;;  %v2887_v57 = vcombine.low %v2256_v28, %v2268_v23  ;;  %v3955_v60 = vpop.permute.xlu1 %2331 }
 0x3ae   : > { %v2974_v18 = vpop.f32.mrb[24].mxu0  ;;  %v2414_v9 = vadd.bf16 %v2885_v13, %v2150_v16  ;;  %v2709_v59 = vunpack.c.l.bf16 %v2693_v61  ;;  %v2710_v27 = vunpack.c.l.bf16 %v2694_v5 }
 0x3af   : > { %v2975_v21 = vpop.f32.mrb[25].mxu0 }
 0x3b0   : > { %v2976_v24 = vadd.f32 %v2975_v21, %v2974_v18  ;;  %v2977_v63 = vpop.f32.mrb[26].mxu0  ;;  %v2422_v12 = vmax.bf16 %v3166_v3, %v2414_v9  ;;  %v2725_v49 = vadd.f32 %v2710_v27, %v2709_v59  ;;  %v2292_v18 = vrot.slane %v3925_v52, %v3453_v14 }
 0x3b1   : > { %v2978_v15 = vpop.f32.mrb[27].mxu0 }
 0x3b2   : > { %v2979_v58 = vadd.f32 %v2978_v15, %v2977_v63  ;;  %v2894_v29 = vcombine.low %v2422_v12, %v2422_v12  ;;  %v2895_v25 = vcombine.high %v2422_v12, %v2422_v12  ;;  %v2528_v63 = vrot.slane %v2520_v56, %v3453_v14  ;;  %v2544_v12 = vpop.permute.xlu0 %2543 }
 0x3b3   : > { %v2888_v27 = vcombine.low %v2280_v39, %v2292_v18  ;;  %v2304_v56 = vrot.slane %v3934_v20, %v3453_v14 }
 0x3b4   : > { %v2151_v31 = vpack.c.bf16 %v2979_v58, %v2976_v24  ;;  %v2695_v42 = vmul.bf16 %v2894_v29, %v2480_v44  ;;  %v2696_v43 = vmul.bf16 %v2895_v25, %v2492_v53  ;;  %v2540_v24 = vrot.slane %v2532_v2, %v3453_v14  ;;  %v2556_v53 = vpop.permute.xlu1 %2555 }
 0x3b6   : > { %v2415_v10 = vadd.bf16 %v2886_v30, %v2151_v31  ;;  %v2980_v47 = vpop.f32.mrb[28].mxu0  ;;  %v2711_v17 = vunpack.c.l.bf16 %v2695_v42  ;;  %v2712_v55 = vunpack.c.l.bf16 %v2696_v43  ;;  %v2316_v43 = vrot.slane %v3940_v41, %v3453_v14  ;;  %v2344_v2 = vpop.permute.xlu0 %2343 }
 0x3b7   : > { %v2981_v38 = vpop.f32.mrb[29].mxu0 }
 0x3b8   : > { %v2423_v33 = vmax.bf16 %v3166_v3, %v2415_v10  ;;  %v2982_v36 = vadd.f32 %v2981_v38, %v2980_v47  ;;  %v2983_v37 = vpop.f32.mrb[30].mxu0  ;;  %v2726_v0 = vadd.f32 %v2725_v49, %v2711_v17  ;;  %v2356_v47 = vpop.permute.xlu1 %2355 }
 0x3b9   : > { %v2984_v4 = vpop.f32.mrb[31].mxu0  ;;  %v2364_v20 = vrot.slane %v2356_v47, %v3453_v14 }
 0x3ba   : > { %v2896_v35 = vcombine.low %v2423_v33, %v2423_v33  ;;  %v2897_v46 = vcombine.high %v2423_v33, %v2423_v33  ;;  %v2985_v48 = vadd.f32 %v2984_v4, %v2983_v37  ;;  %v2727_v45 = vadd.f32 %v2726_v0, %v2712_v55 }
 0x3bb   : > { %v2564_v33 = vrot.slane %v2556_v53, %v3453_v14  ;;  %v2352_v4 = vrot.slane %v2344_v2, %v3453_v14 }
 0x3bc   : > { %v2697_v26 = vmul.bf16 %v2896_v35, %v2504_v6  ;;  %v2698_v13 = vmul.bf16 %v2897_v46, %v2516_v54  ;;  %v2152_v19 = vpack.c.bf16 %v2985_v48, %v2982_v36  ;;  %v2552_v36 = vrot.slane %v2544_v12, %v3453_v14 }
 0x3bd   : > { %v2889_v6 = vcombine.low %v2304_v56, %v2316_v43 }
 0x3be   : > { %v2713_v11 = vunpack.c.l.bf16 %v2697_v26  ;;  %v2416_v16 = vadd.bf16 %v2887_v57, %v2152_v19  ;;  %v2986_v50 = vpop.f32.mrb[32].mxu0  ;;  %v2714_v5 = vunpack.c.l.bf16 %v2698_v13  ;;  %v2580_v57 = vpop.permute.xlu1 %2579 }
 0x3bf   : > { %v2987_v61 = vpop.f32.mrb[33].mxu0 }
 0x3c0   : > { %v2728_v9 = vadd.f32 %v2727_v45, %v2713_v11  ;;  %v2424_v21 = vmax.bf16 %v3166_v3, %v2416_v16  ;;  %v2988_v62 = vadd.f32 %v2987_v61, %v2986_v50  ;;  %v2989_v22 = vpop.f32.mrb[34].mxu0  ;;  %v2568_v45 = vpop.permute.xlu0 %2567  ;;  %v2340_v11 = vrot.slane %v3955_v60, %v3453_v14 }
 0x3c1   : > { %v2990_v15 = vpop.f32.mrb[35].mxu0  ;;  %v2328_v16 = vrot.slane %v3953_v40, %v3453_v14  ;;  %v2891_v50 = vcombine.low %v2352_v4, %v2364_v20 }
 0x3c2   : > { %v2729_v44 = vadd.f32 %v2728_v9, %v2714_v5  ;;  %v2898_v58 = vcombine.low %v2424_v21, %v2424_v21  ;;  %v2899_v52 = vcombine.high %v2424_v21, %v2424_v21  ;;  %v2991_v59 = vadd.f32 %v2990_v15, %v2989_v22 }
 0x3c3   : > { %v2576_v22 = vrot.slane %v2568_v45, %v3453_v14 }
 0x3c4   : > { %v2699_v51 = vmul.bf16 %v2898_v58, %v2528_v63  ;;  %v2700_v29 = vmul.bf16 %v2899_v52, %v2540_v24  ;;  %v2153_v25 = vpack.c.bf16 %v2991_v59, %v2988_v62  ;;  %v2588_v62 = vrot.slane %v2580_v57, %v3453_v14  ;;  %v2592_v53 = vpop.permute.xlu0 %2591 }
 0x3c5   : > { %v2420_v24 = vadd.bf16 %v2891_v50, %v2156_v34  ;;  %v2600_v34 = vrot.slane %v2592_v53, %v3453_v14 }
 0x3c6   : > { %v2715_v30 = vunpack.c.l.bf16 %v2699_v51  ;;  %v2417_v31 = vadd.bf16 %v2888_v27, %v2153_v25  ;;  %v2992_v42 = vpop.f32.mrb[36].mxu0  ;;  %v2716_v49 = vunpack.c.l.bf16 %v2700_v29  ;;  %v2604_v27 = vpop.permute.xlu1 %2603 }
 0x3c7   : > { %v2993_v10 = vpop.f32.mrb[37].mxu0  ;;  %v2428_v51 = vmax.bf16 %v3166_v3, %v2420_v24  ;;  %v2612_v32 = vrot.slane %v2604_v27, %v3453_v14 }
 0x3c8   : > { %v2730_v17 = vadd.f32 %v2729_v44, %v2715_v30  ;;  %v2425_v38 = vmax.bf16 %v3166_v3, %v2417_v31  ;;  %v2994_v23 = vadd.f32 %v2993_v10, %v2992_v42  ;;  %v2995_v28 = vpop.f32.mrb[38].mxu0  ;;  %v2890_v44 = vcombine.low %v2328_v16, %v2340_v11  ;;  %v2616_v42 = vpop.permute.xlu0 %2615 }
 0x3c9   : > { %v2996_v37 = vpop.f32.mrb[39].mxu0  ;;  %v2906_v43 = vcombine.low %v2428_v51, %v2428_v51 }
 0x3ca   : > { %v2731_v54 = vadd.f32 %v2730_v17, %v2716_v49  ;;  %v2900_v55 = vcombine.low %v2425_v38, %v2425_v38  ;;  %v2901_v41 = vcombine.high %v2425_v38, %v2425_v38  ;;  %v2997_v0 = vadd.f32 %v2996_v37, %v2995_v28  ;;  %v2628_v47 = vpop.permute.xlu1 %2627 }
 0x3cb   : > { %v2624_v49 = vrot.slane %v2616_v42, %v3453_v14  ;;  %v2907_v17 = vcombine.high %v2428_v51, %v2428_v51  ;;  %v2636_v28 = vrot.slane %v2628_v47, %v3453_v14 }
 0x3cc   : > { %v2701_v35 = vmul.bf16 %v2900_v55, %v2552_v36  ;;  %v2702_v46 = vmul.bf16 %v2901_v41, %v2564_v33  ;;  %v2154_v48 = vpack.c.bf16 %v2997_v0, %v2994_v23  ;;  %v2750_v45 = vpop.permute.xlu0 %2749 }
 0x3cd   : > { %v2707_v33 = vmul.bf16 %v2906_v43, %v2624_v49  ;;  %v2755_v14 = vrot.slane %v2750_v45, %v491_v8 }
 0x3ce   : > { %v2717_v26 = vunpack.c.l.bf16 %v2701_v35  ;;  %v2418_v13 = vadd.bf16 %v2889_v6, %v2154_v48  ;;  %v2998_v19 = vpop.f32.mrb[40].mxu0  ;;  %v2718_v39 = vunpack.c.l.bf16 %v2702_v46 }
 0x3cf   : > { %v2999_v18 = vpop.f32.mrb[41].mxu0  ;;  %v2723_v55 = vunpack.c.l.bf16 %v2707_v33 }
 0x3d0   : > { %v2732_v61 = vadd.f32 %v2731_v54, %v2717_v26  ;;  %v2426_v5 = vmax.bf16 %v3166_v3, %v2418_v13  ;;  %v3000_v9 = vadd.f32 %v2999_v18, %v2998_v19  ;;  %v3001_v21 = vpop.f32.mrb[42].mxu0 }
 0x3d1   : > { %v3002_v60 = vpop.f32.mrb[43].mxu0 }
 0x3d2   : > { %v2733_v63 = vadd.f32 %v2732_v61, %v2718_v39  ;;  %v2902_v12 = vcombine.low %v2426_v5, %v2426_v5  ;;  %v2903_v40 = vcombine.high %v2426_v5, %v2426_v5  ;;  %v3003_v15 = vadd.f32 %v3002_v60, %v3001_v21 }
 0x3d4   : > { %v2703_v58 = vmul.bf16 %v2902_v12, %v2576_v22  ;;  %v2704_v52 = vmul.bf16 %v2903_v40, %v2588_v62  ;;  %v2155_v59 = vpack.c.bf16 %v3003_v15, %v3000_v9 }
 0x3d6   : > { %v2719_v29 = vunpack.c.l.bf16 %v2703_v58  ;;  %v2419_v25 = vadd.bf16 %v2890_v44, %v2155_v59  ;;  %v2720_v30 = vunpack.c.l.bf16 %v2704_v52 }
 0x3d8   : > { %v2734_v31 = vadd.f32 %v2733_v63, %v2719_v29  ;;  %v2427_v7 = vmax.bf16 %v3166_v3, %v2419_v25  ;;  %v2708_v3 = vmul.bf16 %v2907_v17, %v2636_v28 }
 0x3da   : > { %v2735_v56 = vadd.f32 %v2734_v31, %v2720_v30  ;;  %v2904_v2 = vcombine.low %v2427_v7, %v2427_v7  ;;  %v2905_v10 = vcombine.high %v2427_v7, %v2427_v7  ;;  %v2724_v0 = vunpack.c.l.bf16 %v2708_v3 }
 0x3dc   : > { %v2705_v38 = vmul.bf16 %v2904_v2, %v2600_v34  ;;  %v2706_v23 = vmul.bf16 %v2905_v10, %v2612_v32 }
 0x3de   : > { %v2721_v36 = vunpack.c.l.bf16 %v2705_v38  ;;  %v2722_v37 = vunpack.c.l.bf16 %v2706_v23 }
 0x3e0   : > { %v2736_v54 = vadd.f32 %v2735_v56, %v2721_v36 }
 0x3e2   : > { %v2737_v41 = vadd.f32 %v2736_v54, %v2722_v37 }
 0x3e4   : > { %v2738_v20 = vadd.f32 %v2737_v41, %v2723_v55 }
 0x3e6   : > { %v2739_v4 = vadd.f32 %v2738_v20, %v2724_v0 }
 0x3e8   : > { %v2740_v6 = vrot.slane %v2739_v4, 4 }
 0x3ea   : > { %v2741_v35 = vadd.f32 %v2740_v6, %v2739_v4 }
 0x3ec   : > { %v2742_v46 = vrot.slane %v2741_v35, 2 }
 0x3ee   : > { %v2743_v48 = vadd.f32 %v2742_v46, %v2741_v35 }
 0x3f0   : > { %v2744_v57 = vrot.slane %v2743_v48, 1 }
 0x3f2   : > { %v2745_v26 = vadd.f32 %v2744_v57, %v2743_v48 }
 0x3f4   : > { %v2756_v13 = vadd.f32 %v2755_v14, %v2745_v26 }
 0x3f6   : > { %2757 = vst [vmem:[%s378_s27] sm:$0x1] %v2756_v13 }
 0x3f7 PF: > { %s23_s19 = sadd.s32 1, %s3164_s19  }
 0x3f8   : > { %p20_p4 = scmp.ge.s32.totalorder %s23_s19, 4  }
 0x3fa   :  { %22 = sbr.rel (!%p20_p4) target bundleno = 3 (0x3), region = 94 }

</bundles_post_ra>
